<compile_context>
chip_gen: v7x
topology: tpu7x:2x2x1
jax: 0.10.0
libtpu: 0.0.40
codegen_flags: <defaults>
</compile_context>

<pallas_src>
import functools

import jax
import jax.numpy as jnp
import numpy as np
from jax.experimental import pallas as pl
from jax.experimental.pallas import tpu as pltpu


# ----------------------------------------------------------------------------
# Pallas kernel: fused input projection + interleaved bidirectional GRU
# recurrence + final linear + tanh
# ----------------------------------------------------------------------------
def encoder_kernel(
    emb_ref,                       # [T*B, E]  bf16 (embedded tokens, flattened)
    w_in_ref,                      # [E, 6H]   bf16 ([Wih_f | Wih_b])
    b_in_ref,                      # [1, 6H]   f32  (bih + bhh_{r,z} folded)
    whh_f_ref, whh_b_ref,          # [H, 3H]   bf16
    bhh_nf_ref, bhh_nb_ref,        # [1, H]    f32  (n-gate hidden biases)
    w_lin_ref,                     # [2H, D]   bf16
    b_lin_ref,                     # [1, D]    f32
    out_ref,                       # [T, B, 2H] f32  (fused fwd|bwd outputs)
    dec_ref,                       # [B, D]     f32
):
    T, B, H2 = out_ref.shape
    H = H2 // 2

    # ---- hoisted weight / bias loads (nothing re-read inside the loop) ----
    w_in = w_in_ref[...]
    b_in = b_in_ref[...]
    whh_f = whh_f_ref[...]
    whh_b = whh_b_ref[...]
    bhh_nf = bhh_nf_ref[...]
    bhh_nb = bhh_nb_ref[...]

    # ---- one lane-dense input projection for BOTH directions ------------
    # GI[t*B + b, :] = emb[t, b] @ [Wih_f | Wih_b] + (bih + bhh_rz)  -> [T*B, 6H]
    gi_all = jnp.dot(emb_ref[...], w_in, preferred_element_type=jnp.float32) + b_in
    gi_f_all = gi_all[:, 0:3 * H]          # split once, outside the loop
    gi_b_all = gi_all[:, 3 * H:6 * H]

    def gru_cell(gi, h, whh, bhh_n):
        # torch GRU (bih / bhh_r / bhh_z already folded into gi):
        #   r = sigmoid(gi_r + W_hr h);  z = sigmoid(gi_z + W_hz h)
        #   n = tanh(gi_n + r * (W_hn h + b_hn));  h' = (1 - z) * n + z * h
        gh = jnp.dot(h.astype(jnp.bfloat16), whh,
                     preferred_element_type=jnp.float32)
        r = jax.nn.sigmoid(gi[:, 0:H] + gh[:, 0:H])
        z = jax.nn.sigmoid(gi[:, H:2 * H] + gh[:, H:2 * H])
        n = jnp.tanh(gi[:, 2 * H:3 * H] + r * (gh[:, 2 * H:3 * H] + bhh_n))
        return (1.0 - z) * n + z * h

    h_f = jnp.zeros((B, H), jnp.float32)
    h_b = jnp.zeros((B, H), jnp.float32)

    # ---- interleaved, fully static unrolled recurrence -------------------
    # T is a small static trip count; static unroll gives the scheduler two
    # independent MXU chains per step and static store indices.
    for step in range(T):
        tf = step
        tb = T - 1 - step
        gi_f = gi_f_all[tf * B:(tf + 1) * B, :]
        gi_b = gi_b_all[tb * B:(tb + 1) * B, :]
        h_f = gru_cell(gi_f, h_f, whh_f, bhh_nf)
        h_b = gru_cell(gi_b, h_b, whh_b, bhh_nb)
        out_ref[tf, :, 0:H] = h_f          # fused [T,B,2H] output: fwd half
        out_ref[tb, :, H:2 * H] = h_b      # bwd half (aligned to time tb)

    # dec = tanh([h_f ; h_b] @ W_lin + b_lin) as split matmuls (no in-kernel concat)
    dec = (
        jnp.dot(h_f.astype(jnp.bfloat16), w_lin_ref[0:H, :],
                preferred_element_type=jnp.float32)
        + jnp.dot(h_b.astype(jnp.bfloat16), w_lin_ref[H:2 * H, :],
                  preferred_element_type=jnp.float32)
        + b_lin_ref[...]
    )
    dec_ref[...] = jnp.tanh(dec)


# ----------------------------------------------------------------------------
# Wrapper: embedding gather (glue), parameter layout prep, pallas_call
# ----------------------------------------------------------------------------
@functools.partial(jax.jit, static_argnames=())
def encoder_forward(phases_batch, params):
    """phases_batch: [T, B] int32.  Returns (outputs [T,B,2H], dec_hidden [B,D])."""
    emb_table = params["embedding"]                 # [V, E]
    T, B = phases_batch.shape
    H = params["whh_f"].shape[0]
    D = params["w_lin"].shape[1]

    # Embedding gather (glue) — flattened to [T*B, E]; dropout is eval identity.
    # TODO(synk): nn.Dropout is inference-mode identity here (deterministic kernel).
    # TODO(synk): for large T*B*E, fuse the gather via scalar prefetch / DMA and
    #             stream GI tiles instead of whole-array VMEM residency
    #             (matters first on v7x 64MiB VMEM and v5e 16MiB scoped default).
    emb2d = emb_table[phases_batch.reshape(T * B)].astype(jnp.bfloat16)

    # One-time parameter layout prep (weight concat, bias folding, bf16 cast).
    zH = jnp.zeros((1, H), jnp.float32)
    w_in = jnp.concatenate([params["wih_f"], params["wih_b"]], axis=1).astype(jnp.bfloat16)
    b_in = jnp.concatenate(
        [params["bih_f"] + jnp.concatenate([params["bhh_f"][:, :2 * H], zH], axis=1),
         params["bih_b"] + jnp.concatenate([params["bhh_b"][:, :2 * H], zH], axis=1)],
        axis=1)                                                 # [1, 6H] f32
    whh_f = params["whh_f"].astype(jnp.bfloat16)
    whh_b = params["whh_b"].astype(jnp.bfloat16)
    bhh_nf = params["bhh_f"][:, 2 * H:3 * H]                    # [1, H] f32
    bhh_nb = params["bhh_b"][:, 2 * H:3 * H]
    w_lin = params["w_lin"].astype(jnp.bfloat16)
    b_lin = params["b_lin"]

    vmem = pl.BlockSpec(memory_space=pltpu.MemorySpace.VMEM)
    outputs, dec = pl.pallas_call(
        encoder_kernel,
        out_shape=(
            jax.ShapeDtypeStruct((T, B, 2 * H), jnp.float32),
            jax.ShapeDtypeStruct((B, D), jnp.float32),
        ),
        in_specs=[vmem] * 9,
        out_specs=(vmem, vmem),
    )(emb2d, w_in, b_in, whh_f, whh_b, bhh_nf, bhh_nb, w_lin, b_lin)
    return outputs, dec


# ----------------------------------------------------------------------------
# Pure-JAX f32 reference (for correctness check)
# ----------------------------------------------------------------------------
def encoder_reference(phases_batch, params):
    emb = params["embedding"][phases_batch].astype(jnp.float32)   # [T, B, E]
    T, B, _ = emb.shape
    H = params["whh_f"].shape[0]

    def cell(x, h, wih, whh, bih, bhh):
        gi = x @ wih + bih
        gh = h @ whh + bhh
        r = jax.nn.sigmoid(gi[:, 0:H] + gh[:, 0:H])
        z = jax.nn.sigmoid(gi[:, H:2 * H] + gh[:, H:2 * H])
        n = jnp.tanh(gi[:, 2 * H:3 * H] + r * gh[:, 2 * H:3 * H])
        return (1.0 - z) * n + z * h

    h = jnp.zeros((B, H), jnp.float32)
    outs_f = []
    for t in range(T):
        h = cell(emb[t], h, params["wih_f"], params["whh_f"],
                 params["bih_f"], params["bhh_f"])
        outs_f.append(h)
    h_fwd = h

    h = jnp.zeros((B, H), jnp.float32)
    outs_b = [None] * T
    for t in range(T - 1, -1, -1):
        h = cell(emb[t], h, params["wih_b"], params["whh_b"],
                 params["bih_b"], params["bhh_b"])
        outs_b[t] = h
    h_bwd = h

    outputs = jnp.concatenate(
        [jnp.stack(outs_f, axis=0), jnp.stack(outs_b, axis=0)], axis=-1)
    enc_h = jnp.concatenate([h_fwd, h_bwd], axis=1)
    dec = jnp.tanh(enc_h @ params["w_lin"] + params["b_lin"])
    return outputs, dec


# ----------------------------------------------------------------------------
# Deterministic parameter init (synthetic weights, PyTorch-like scales)
# ----------------------------------------------------------------------------
def init_params(key, vocab_dim, embedding_dim, enc_hidden, dec_hidden):
    ks = jax.random.split(key, 12)
    H, E, D = enc_hidden, embedding_dim, dec_hidden
    s = 1.0 / np.sqrt(H)

    def u(k, shape, scale):
        return jax.random.uniform(k, shape, jnp.float32, -scale, scale)

    return {
        "embedding": jax.random.normal(ks[0], (vocab_dim, E), jnp.float32),
        "wih_f": u(ks[1], (E, 3 * H), s), "whh_f": u(ks[2], (H, 3 * H), s),
        "bih_f": u(ks[3], (1, 3 * H), s), "bhh_f": u(ks[4], (1, 3 * H), s),
        "wih_b": u(ks[5], (E, 3 * H), s), "whh_b": u(ks[6], (H, 3 * H), s),
        "bih_b": u(ks[7], (1, 3 * H), s), "bhh_b": u(ks[8], (1, 3 * H), s),
        "w_lin": u(ks[9], (2 * H, D), 1.0 / np.sqrt(2 * H)),
        "b_lin": u(ks[10], (1, D), 1.0 / np.sqrt(2 * H)),
    }


if __name__ == "__main__":
    # small shapes consistent with the module's forward
    vocab_dim, embedding_dim = 20, 32
    enc_hidden, dec_hidden = 32, 32
    seq_len, batch = 8, 2

    key = jax.random.PRNGKey(0)
    k_tok, k_par = jax.random.split(key)
    params = init_params(k_par, vocab_dim, embedding_dim, enc_hidden, dec_hidden)
    phases_batch = jax.random.randint(k_tok, (seq_len, batch), 0, vocab_dim,
                                      dtype=jnp.int32)

    outputs, dec_hidden_state = encoder_forward(phases_batch, params)
    outputs = jax.block_until_ready(outputs)
    dec_hidden_state = jax.block_until_ready(dec_hidden_state)

    ref_out, ref_dec = encoder_reference(phases_batch, params)

    assert outputs.shape == (seq_len, batch, 2 * enc_hidden)
    assert dec_hidden_state.shape == (batch, dec_hidden)
    # Tolerance loosened vs. f32 reference because MXU operands are bf16
    # (f32 accumulation); expected max error ~1e-2, margin ~3x.
    np.testing.assert_allclose(np.asarray(outputs), np.asarray(ref_out),
                               rtol=3e-2, atol=3e-2)
    np.testing.assert_allclose(np.asarray(dec_hidden_state), np.asarray(ref_dec),
                               rtol=3e-2, atol=3e-2)
    print("KERNEL_OK")
</pallas_src>

<mosaic_0001>
module attributes {stable_mosaic.version = 11 : i64} {
  func.func @encoder_kernel(%arg0: memref<16x32xbf16, #tpu.memory_space<vmem>>, %arg1: memref<32x192xbf16, #tpu.memory_space<vmem>>, %arg2: memref<1x192xf32, #tpu.memory_space<vmem>>, %arg3: memref<32x96xbf16, #tpu.memory_space<vmem>>, %arg4: memref<32x96xbf16, #tpu.memory_space<vmem>>, %arg5: memref<1x32xf32, #tpu.memory_space<vmem>>, %arg6: memref<1x32xf32, #tpu.memory_space<vmem>>, %arg7: memref<64x32xbf16, #tpu.memory_space<vmem>>, %arg8: memref<1x32xf32, #tpu.memory_space<vmem>>, %arg9: memref<8x2x64xf32, #tpu.memory_space<vmem>>, %arg10: memref<2x32xf32, #tpu.memory_space<vmem>>) attributes {dimension_semantics = [], scalar_prefetch = 0 : i64, scratch_operands = 0 : i64, tpu.core_type = #tpu.core_type<tc>} {
    %c0 = arith.constant 0 : index
    %c0_0 = arith.constant 0 : index
    %0 = vector.load %arg1[%c0, %c0_0] : memref<32x192xbf16, #tpu.memory_space<vmem>>, vector<32x192xbf16>
    %c0_1 = arith.constant 0 : index
    %c0_2 = arith.constant 0 : index
    %1 = vector.load %arg2[%c0_1, %c0_2] : memref<1x192xf32, #tpu.memory_space<vmem>>, vector<1x192xf32>
    %c0_3 = arith.constant 0 : index
    %c0_4 = arith.constant 0 : index
    %2 = vector.load %arg3[%c0_3, %c0_4] : memref<32x96xbf16, #tpu.memory_space<vmem>>, vector<32x96xbf16>
    %c0_5 = arith.constant 0 : index
    %c0_6 = arith.constant 0 : index
    %3 = vector.load %arg4[%c0_5, %c0_6] : memref<32x96xbf16, #tpu.memory_space<vmem>>, vector<32x96xbf16>
    %c0_7 = arith.constant 0 : index
    %c0_8 = arith.constant 0 : index
    %4 = vector.load %arg5[%c0_7, %c0_8] : memref<1x32xf32, #tpu.memory_space<vmem>>, vector<1x32xf32>
    %c0_9 = arith.constant 0 : index
    %c0_10 = arith.constant 0 : index
    %5 = vector.load %arg6[%c0_9, %c0_10] : memref<1x32xf32, #tpu.memory_space<vmem>>, vector<1x32xf32>
    %c0_11 = arith.constant 0 : index
    %c0_12 = arith.constant 0 : index
    %6 = vector.load %arg0[%c0_11, %c0_12] : memref<16x32xbf16, #tpu.memory_space<vmem>>, vector<16x32xbf16>
    %cst = arith.constant dense<0.000000e+00> : vector<16x192xf32>
    %7 = tpu.matmul %6, %0, %cst {dimension_numbers = #tpu.dot_dimension_numbers<[1], [0], [0], [1], [0, 0, 1, 1], [], []>} : vector<16x32xbf16>, vector<32x192xbf16>, vector<16x192xf32> -> vector<16x192xf32>
    %8 = vector.broadcast %1 : vector<1x192xf32> to vector<16x192xf32>
    %9 = arith.addf %7, %8 : vector<16x192xf32>
    %10 = vector.extract_strided_slice %9 {offsets = [0, 0], sizes = [16, 96], strides = [1, 1]} : vector<16x192xf32> to vector<16x96xf32>
    %11 = vector.extract_strided_slice %9 {offsets = [0, 96], sizes = [16, 96], strides = [1, 1]} : vector<16x192xf32> to vector<16x96xf32>
    %cst_13 = arith.constant 0.000000e+00 : f32
    %12 = vector.broadcast %cst_13 : f32 to vector<2x32xf32>
    %cst_14 = arith.constant 0.000000e+00 : f32
    %13 = vector.broadcast %cst_14 : f32 to vector<2x32xf32>
    %14 = vector.extract_strided_slice %10 {offsets = [0, 0], sizes = [2, 96], strides = [1, 1]} : vector<16x96xf32> to vector<2x96xf32>
    %15 = vector.extract_strided_slice %11 {offsets = [14, 0], sizes = [2, 96], strides = [1, 1]} : vector<16x96xf32> to vector<2x96xf32>
    %16 = arith.truncf %12 : vector<2x32xf32> to vector<2x32xbf16>
    %cst_15 = arith.constant dense<0.000000e+00> : vector<2x96xf32>
    %17 = tpu.matmul %16, %2, %cst_15 {dimension_numbers = #tpu.dot_dimension_numbers<[1], [0], [0], [1], [0, 0, 1, 1], [], []>} : vector<2x32xbf16>, vector<32x96xbf16>, vector<2x96xf32> -> vector<2x96xf32>
    %18 = vector.extract_strided_slice %14 {offsets = [0, 0], sizes = [2, 32], strides = [1, 1]} : vector<2x96xf32> to vector<2x32xf32>
    %19 = vector.extract_strided_slice %17 {offsets = [0, 0], sizes = [2, 32], strides = [1, 1]} : vector<2x96xf32> to vector<2x32xf32>
    %20 = arith.addf %18, %19 : vector<2x32xf32>
    %21 = arith.negf %20 : vector<2x32xf32>
    %22 = math.exp %21 : vector<2x32xf32>
    %cst_16 = arith.constant 1.000000e+00 : f32
    %23 = vector.broadcast %cst_16 : f32 to vector<2x32xf32>
    %24 = arith.addf %23, %22 : vector<2x32xf32>
    %25 = arith.divf %23, %24 : vector<2x32xf32>
    %26 = vector.extract_strided_slice %14 {offsets = [0, 32], sizes = [2, 32], strides = [1, 1]} : vector<2x96xf32> to vector<2x32xf32>
    %27 = vector.extract_strided_slice %17 {offsets = [0, 32], sizes = [2, 32], strides = [1, 1]} : vector<2x96xf32> to vector<2x32xf32>
    %28 = arith.addf %26, %27 : vector<2x32xf32>
    %29 = arith.negf %28 : vector<2x32xf32>
    %30 = math.exp %29 : vector<2x32xf32>
    %cst_17 = arith.constant 1.000000e+00 : f32
    %31 = vector.broadcast %cst_17 : f32 to vector<2x32xf32>
    %32 = arith.addf %31, %30 : vector<2x32xf32>
    %33 = arith.divf %31, %32 : vector<2x32xf32>
    %34 = vector.extract_strided_slice %14 {offsets = [0, 64], sizes = [2, 32], strides = [1, 1]} : vector<2x96xf32> to vector<2x32xf32>
    %35 = vector.extract_strided_slice %17 {offsets = [0, 64], sizes = [2, 32], strides = [1, 1]} : vector<2x96xf32> to vector<2x32xf32>
    %36 = vector.broadcast %4 : vector<1x32xf32> to vector<2x32xf32>
    %37 = arith.addf %35, %36 : vector<2x32xf32>
    %38 = arith.mulf %25, %37 : vector<2x32xf32>
    %39 = arith.addf %34, %38 : vector<2x32xf32>
    %40 = math.tanh %39 : vector<2x32xf32>
    %cst_18 = arith.constant 1.000000e+00 : f32
    %41 = vector.broadcast %cst_18 : f32 to vector<2x32xf32>
    %42 = arith.subf %41, %33 : vector<2x32xf32>
    %43 = arith.mulf %42, %40 : vector<2x32xf32>
    %44 = arith.mulf %33, %12 : vector<2x32xf32>
    %45 = arith.addf %43, %44 : vector<2x32xf32>
    %46 = arith.truncf %13 : vector<2x32xf32> to vector<2x32xbf16>
    %cst_19 = arith.constant dense<0.000000e+00> : vector<2x96xf32>
    %47 = tpu.matmul %46, %3, %cst_19 {dimension_numbers = #tpu.dot_dimension_numbers<[1], [0], [0], [1], [0, 0, 1, 1], [], []>} : vector<2x32xbf16>, vector<32x96xbf16>, vector<2x96xf32> -> vector<2x96xf32>
    %48 = vector.extract_strided_slice %15 {offsets = [0, 0], sizes = [2, 32], strides = [1, 1]} : vector<2x96xf32> to vector<2x32xf32>
    %49 = vector.extract_strided_slice %47 {offsets = [0, 0], sizes = [2, 32], strides = [1, 1]} : vector<2x96xf32> to vector<2x32xf32>
    %50 = arith.addf %48, %49 : vector<2x32xf32>
    %51 = arith.negf %50 : vector<2x32xf32>
    %52 = math.exp %51 : vector<2x32xf32>
    %cst_20 = arith.constant 1.000000e+00 : f32
    %53 = vector.broadcast %cst_20 : f32 to vector<2x32xf32>
    %54 = arith.addf %53, %52 : vector<2x32xf32>
    %55 = arith.divf %53, %54 : vector<2x32xf32>
    %56 = vector.extract_strided_slice %15 {offsets = [0, 32], sizes = [2, 32], strides = [1, 1]} : vector<2x96xf32> to vector<2x32xf32>
    %57 = vector.extract_strided_slice %47 {offsets = [0, 32], sizes = [2, 32], strides = [1, 1]} : vector<2x96xf32> to vector<2x32xf32>
    %58 = arith.addf %56, %57 : vector<2x32xf32>
    %59 = arith.negf %58 : vector<2x32xf32>
    %60 = math.exp %59 : vector<2x32xf32>
    %cst_21 = arith.constant 1.000000e+00 : f32
    %61 = vector.broadcast %cst_21 : f32 to vector<2x32xf32>
    %62 = arith.addf %61, %60 : vector<2x32xf32>
    %63 = arith.divf %61, %62 : vector<2x32xf32>
    %64 = vector.extract_strided_slice %15 {offsets = [0, 64], sizes = [2, 32], strides = [1, 1]} : vector<2x96xf32> to vector<2x32xf32>
    %65 = vector.extract_strided_slice %47 {offsets = [0, 64], sizes = [2, 32], strides = [1, 1]} : vector<2x96xf32> to vector<2x32xf32>
    %66 = vector.broadcast %5 : vector<1x32xf32> to vector<2x32xf32>
    %67 = arith.addf %65, %66 : vector<2x32xf32>
    %68 = arith.mulf %55, %67 : vector<2x32xf32>
    %69 = arith.addf %64, %68 : vector<2x32xf32>
    %70 = math.tanh %69 : vector<2x32xf32>
    %cst_22 = arith.constant 1.000000e+00 : f32
    %71 = vector.broadcast %cst_22 : f32 to vector<2x32xf32>
    %72 = arith.subf %71, %63 : vector<2x32xf32>
    %73 = arith.mulf %72, %70 : vector<2x32xf32>
    %74 = arith.mulf %63, %13 : vector<2x32xf32>
    %75 = arith.addf %73, %74 : vector<2x32xf32>
    %c0_23 = arith.constant 0 : index
    %c0_24 = arith.constant 0 : index
    %c0_25 = arith.constant 0 : index
    %76 = vector.load %arg9[%c0_23, %c0_24, %c0_25] : memref<8x2x64xf32, #tpu.memory_space<vmem>>, vector<1x2x32xf32>
    %77 = vector.shape_cast %76 : vector<1x2x32xf32> to vector<2x32xf32>
    %78 = vector.shape_cast %45 : vector<2x32xf32> to vector<1x2x32xf32>
    tpu.vector_store %arg9[%c0_23, %c0_24, %c0_25], %78 {strides = array<i32>} : memref<8x2x64xf32, #tpu.memory_space<vmem>>, vector<1x2x32xf32>,
    %c7 = arith.constant 7 : index
    %c0_26 = arith.constant 0 : index
    %c32 = arith.constant 32 : index
    %79 = vector.load %arg9[%c7, %c0_26, %c32] : memref<8x2x64xf32, #tpu.memory_space<vmem>>, vector<1x2x32xf32>
    %80 = vector.shape_cast %79 : vector<1x2x32xf32> to vector<2x32xf32>
    %81 = vector.shape_cast %75 : vector<2x32xf32> to vector<1x2x32xf32>
    tpu.vector_store %arg9[%c7, %c0_26, %c32], %81 {strides = array<i32>} : memref<8x2x64xf32, #tpu.memory_space<vmem>>, vector<1x2x32xf32>,
    %82 = vector.extract_strided_slice %10 {offsets = [2, 0], sizes = [2, 96], strides = [1, 1]} : vector<16x96xf32> to vector<2x96xf32>
    %83 = vector.extract_strided_slice %11 {offsets = [12, 0], sizes = [2, 96], strides = [1, 1]} : vector<16x96xf32> to vector<2x96xf32>
    %84 = arith.truncf %45 : vector<2x32xf32> to vector<2x32xbf16>
    %cst_27 = arith.constant dense<0.000000e+00> : vector<2x96xf32>
    %85 = tpu.matmul %84, %2, %cst_27 {dimension_numbers = #tpu.dot_dimension_numbers<[1], [0], [0], [1], [0, 0, 1, 1], [], []>} : vector<2x32xbf16>, vector<32x96xbf16>, vector<2x96xf32> -> vector<2x96xf32>
    %86 = vector.extract_strided_slice %82 {offsets = [0, 0], sizes = [2, 32], strides = [1, 1]} : vector<2x96xf32> to vector<2x32xf32>
    %87 = vector.extract_strided_slice %85 {offsets = [0, 0], sizes = [2, 32], strides = [1, 1]} : vector<2x96xf32> to vector<2x32xf32>
    %88 = arith.addf %86, %87 : vector<2x32xf32>
    %89 = arith.negf %88 : vector<2x32xf32>
    %90 = math.exp %89 : vector<2x32xf32>
    %cst_28 = arith.constant 1.000000e+00 : f32
    %91 = vector.broadcast %cst_28 : f32 to vector<2x32xf32>
    %92 = arith.addf %91, %90 : vector<2x32xf32>
    %93 = arith.divf %91, %92 : vector<2x32xf32>
    %94 = vector.extract_strided_slice %82 {offsets = [0, 32], sizes = [2, 32], strides = [1, 1]} : vector<2x96xf32> to vector<2x32xf32>
    %95 = vector.extract_strided_slice %85 {offsets = [0, 32], sizes = [2, 32], strides = [1, 1]} : vector<2x96xf32> to vector<2x32xf32>
    %96 = arith.addf %94, %95 : vector<2x32xf32>
    %97 = arith.negf %96 : vector<2x32xf32>
    %98 = math.exp %97 : vector<2x32xf32>
    %cst_29 = arith.constant 1.000000e+00 : f32
    %99 = vector.broadcast %cst_29 : f32 to vector<2x32xf32>
    %100 = arith.addf %99, %98 : vector<2x32xf32>
    %101 = arith.divf %99, %100 : vector<2x32xf32>
    %102 = vector.extract_strided_slice %82 {offsets = [0, 64], sizes = [2, 32], strides = [1, 1]} : vector<2x96xf32> to vector<2x32xf32>
    %103 = vector.extract_strided_slice %85 {offsets = [0, 64], sizes = [2, 32], strides = [1, 1]} : vector<2x96xf32> to vector<2x32xf32>
    %104 = vector.broadcast %4 : vector<1x32xf32> to vector<2x32xf32>
    %105 = arith.addf %103, %104 : vector<2x32xf32>
    %106 = arith.mulf %93, %105 : vector<2x32xf32>
    %107 = arith.addf %102, %106 : vector<2x32xf32>
    %108 = math.tanh %107 : vector<2x32xf32>
    %cst_30 = arith.constant 1.000000e+00 : f32
    %109 = vector.broadcast %cst_30 : f32 to vector<2x32xf32>
    %110 = arith.subf %109, %101 : vector<2x32xf32>
    %111 = arith.mulf %110, %108 : vector<2x32xf32>
    %112 = arith.mulf %101, %45 : vector<2x32xf32>
    %113 = arith.addf %111, %112 : vector<2x32xf32>
    %114 = arith.truncf %75 : vector<2x32xf32> to vector<2x32xbf16>
    %cst_31 = arith.constant dense<0.000000e+00> : vector<2x96xf32>
    %115 = tpu.matmul %114, %3, %cst_31 {dimension_numbers = #tpu.dot_dimension_numbers<[1], [0], [0], [1], [0, 0, 1, 1], [], []>} : vector<2x32xbf16>, vector<32x96xbf16>, vector<2x96xf32> -> vector<2x96xf32>
    %116 = vector.extract_strided_slice %83 {offsets = [0, 0], sizes = [2, 32], strides = [1, 1]} : vector<2x96xf32> to vector<2x32xf32>
    %117 = vector.extract_strided_slice %115 {offsets = [0, 0], sizes = [2, 32], strides = [1, 1]} : vector<2x96xf32> to vector<2x32xf32>
    %118 = arith.addf %116, %117 : vector<2x32xf32>
    %119 = arith.negf %118 : vector<2x32xf32>
    %120 = math.exp %119 : vector<2x32xf32>
    %cst_32 = arith.constant 1.000000e+00 : f32
    %121 = vector.broadcast %cst_32 : f32 to vector<2x32xf32>
    %122 = arith.addf %121, %120 : vector<2x32xf32>
    %123 = arith.divf %121, %122 : vector<2x32xf32>
    %124 = vector.extract_strided_slice %83 {offsets = [0, 32], sizes = [2, 32], strides = [1, 1]} : vector<2x96xf32> to vector<2x32xf32>
    %125 = vector.extract_strided_slice %115 {offsets = [0, 32], sizes = [2, 32], strides = [1, 1]} : vector<2x96xf32> to vector<2x32xf32>
    %126 = arith.addf %124, %125 : vector<2x32xf32>
    %127 = arith.negf %126 : vector<2x32xf32>
    %128 = math.exp %127 : vector<2x32xf32>
    %cst_33 = arith.constant 1.000000e+00 : f32
    %129 = vector.broadcast %cst_33 : f32 to vector<2x32xf32>
    %130 = arith.addf %129, %128 : vector<2x32xf32>
    %131 = arith.divf %129, %130 : vector<2x32xf32>
    %132 = vector.extract_strided_slice %83 {offsets = [0, 64], sizes = [2, 32], strides = [1, 1]} : vector<2x96xf32> to vector<2x32xf32>
    %133 = vector.extract_strided_slice %115 {offsets = [0, 64], sizes = [2, 32], strides = [1, 1]} : vector<2x96xf32> to vector<2x32xf32>
    %134 = vector.broadcast %5 : vector<1x32xf32> to vector<2x32xf32>
    %135 = arith.addf %133, %134 : vector<2x32xf32>
    %136 = arith.mulf %123, %135 : vector<2x32xf32>
    %137 = arith.addf %132, %136 : vector<2x32xf32>
    %138 = math.tanh %137 : vector<2x32xf32>
    %cst_34 = arith.constant 1.000000e+00 : f32
    %139 = vector.broadcast %cst_34 : f32 to vector<2x32xf32>
    %140 = arith.subf %139, %131 : vector<2x32xf32>
    %141 = arith.mulf %140, %138 : vector<2x32xf32>
    %142 = arith.mulf %131, %75 : vector<2x32xf32>
    %143 = arith.addf %141, %142 : vector<2x32xf32>
    %c1 = arith.constant 1 : index
    %c0_35 = arith.constant 0 : index
    %c0_36 = arith.constant 0 : index
    %144 = vector.load %arg9[%c1, %c0_35, %c0_36] : memref<8x2x64xf32, #tpu.memory_space<vmem>>, vector<1x2x32xf32>
    %145 = vector.shape_cast %144 : vector<1x2x32xf32> to vector<2x32xf32>
    %146 = vector.shape_cast %113 : vector<2x32xf32> to vector<1x2x32xf32>
    tpu.vector_store %arg9[%c1, %c0_35, %c0_36], %146 {strides = array<i32>} : memref<8x2x64xf32, #tpu.memory_space<vmem>>, vector<1x2x32xf32>,
    %c6 = arith.constant 6 : index
    %c0_37 = arith.constant 0 : index
    %c32_38 = arith.constant 32 : index
    %147 = vector.load %arg9[%c6, %c0_37, %c32_38] : memref<8x2x64xf32, #tpu.memory_space<vmem>>, vector<1x2x32xf32>
    %148 = vector.shape_cast %147 : vector<1x2x32xf32> to vector<2x32xf32>
    %149 = vector.shape_cast %143 : vector<2x32xf32> to vector<1x2x32xf32>
    tpu.vector_store %arg9[%c6, %c0_37, %c32_38], %149 {strides = array<i32>} : memref<8x2x64xf32, #tpu.memory_space<vmem>>, vector<1x2x32xf32>,
    %150 = vector.extract_strided_slice %10 {offsets = [4, 0], sizes = [2, 96], strides = [1, 1]} : vector<16x96xf32> to vector<2x96xf32>
    %151 = vector.extract_strided_slice %11 {offsets = [10, 0], sizes = [2, 96], strides = [1, 1]} : vector<16x96xf32> to vector<2x96xf32>
    %152 = arith.truncf %113 : vector<2x32xf32> to vector<2x32xbf16>
    %cst_39 = arith.constant dense<0.000000e+00> : vector<2x96xf32>
    %153 = tpu.matmul %152, %2, %cst_39 {dimension_numbers = #tpu.dot_dimension_numbers<[1], [0], [0], [1], [0, 0, 1, 1], [], []>} : vector<2x32xbf16>, vector<32x96xbf16>, vector<2x96xf32> -> vector<2x96xf32>
    %154 = vector.extract_strided_slice %150 {offsets = [0, 0], sizes = [2, 32], strides = [1, 1]} : vector<2x96xf32> to vector<2x32xf32>
    %155 = vector.extract_strided_slice %153 {offsets = [0, 0], sizes = [2, 32], strides = [1, 1]} : vector<2x96xf32> to vector<2x32xf32>
    %156 = arith.addf %154, %155 : vector<2x32xf32>
    %157 = arith.negf %156 : vector<2x32xf32>
    %158 = math.exp %157 : vector<2x32xf32>
    %cst_40 = arith.constant 1.000000e+00 : f32
    %159 = vector.broadcast %cst_40 : f32 to vector<2x32xf32>
    %160 = arith.addf %159, %158 : vector<2x32xf32>
    %161 = arith.divf %159, %160 : vector<2x32xf32>
    %162 = vector.extract_strided_slice %150 {offsets = [0, 32], sizes = [2, 32], strides = [1, 1]} : vector<2x96xf32> to vector<2x32xf32>
    %163 = vector.extract_strided_slice %153 {offsets = [0, 32], sizes = [2, 32], strides = [1, 1]} : vector<2x96xf32> to vector<2x32xf32>
    %164 = arith.addf %162, %163 : vector<2x32xf32>
    %165 = arith.negf %164 : vector<2x32xf32>
    %166 = math.exp %165 : vector<2x32xf32>
    %cst_41 = arith.constant 1.000000e+00 : f32
    %167 = vector.broadcast %cst_41 : f32 to vector<2x32xf32>
    %168 = arith.addf %167, %166 : vector<2x32xf32>
    %169 = arith.divf %167, %168 : vector<2x32xf32>
    %170 = vector.extract_strided_slice %150 {offsets = [0, 64], sizes = [2, 32], strides = [1, 1]} : vector<2x96xf32> to vector<2x32xf32>
    %171 = vector.extract_strided_slice %153 {offsets = [0, 64], sizes = [2, 32], strides = [1, 1]} : vector<2x96xf32> to vector<2x32xf32>
    %172 = vector.broadcast %4 : vector<1x32xf32> to vector<2x32xf32>
    %173 = arith.addf %171, %172 : vector<2x32xf32>
    %174 = arith.mulf %161, %173 : vector<2x32xf32>
    %175 = arith.addf %170, %174 : vector<2x32xf32>
    %176 = math.tanh %175 : vector<2x32xf32>
    %cst_42 = arith.constant 1.000000e+00 : f32
    %177 = vector.broadcast %cst_42 : f32 to vector<2x32xf32>
    %178 = arith.subf %177, %169 : vector<2x32xf32>
    %179 = arith.mulf %178, %176 : vector<2x32xf32>
    %180 = arith.mulf %169, %113 : vector<2x32xf32>
    %181 = arith.addf %179, %180 : vector<2x32xf32>
    %182 = arith.truncf %143 : vector<2x32xf32> to vector<2x32xbf16>
    %cst_43 = arith.constant dense<0.000000e+00> : vector<2x96xf32>
    %183 = tpu.matmul %182, %3, %cst_43 {dimension_numbers = #tpu.dot_dimension_numbers<[1], [0], [0], [1], [0, 0, 1, 1], [], []>} : vector<2x32xbf16>, vector<32x96xbf16>, vector<2x96xf32> -> vector<2x96xf32>
    %184 = vector.extract_strided_slice %151 {offsets = [0, 0], sizes = [2, 32], strides = [1, 1]} : vector<2x96xf32> to vector<2x32xf32>
    %185 = vector.extract_strided_slice %183 {offsets = [0, 0], sizes = [2, 32], strides = [1, 1]} : vector<2x96xf32> to vector<2x32xf32>
    %186 = arith.addf %184, %185 : vector<2x32xf32>
    %187 = arith.negf %186 : vector<2x32xf32>
    %188 = math.exp %187 : vector<2x32xf32>
    %cst_44 = arith.constant 1.000000e+00 : f32
    %189 = vector.broadcast %cst_44 : f32 to vector<2x32xf32>
    %190 = arith.addf %189, %188 : vector<2x32xf32>
    %191 = arith.divf %189, %190 : vector<2x32xf32>
    %192 = vector.extract_strided_slice %151 {offsets = [0, 32], sizes = [2, 32], strides = [1, 1]} : vector<2x96xf32> to vector<2x32xf32>
    %193 = vector.extract_strided_slice %183 {offsets = [0, 32], sizes = [2, 32], strides = [1, 1]} : vector<2x96xf32> to vector<2x32xf32>
    %194 = arith.addf %192, %193 : vector<2x32xf32>
    %195 = arith.negf %194 : vector<2x32xf32>
    %196 = math.exp %195 : vector<2x32xf32>
    %cst_45 = arith.constant 1.000000e+00 : f32
    %197 = vector.broadcast %cst_45 : f32 to vector<2x32xf32>
    %198 = arith.addf %197, %196 : vector<2x32xf32>
    %199 = arith.divf %197, %198 : vector<2x32xf32>
    %200 = vector.extract_strided_slice %151 {offsets = [0, 64], sizes = [2, 32], strides = [1, 1]} : vector<2x96xf32> to vector<2x32xf32>
    %201 = vector.extract_strided_slice %183 {offsets = [0, 64], sizes = [2, 32], strides = [1, 1]} : vector<2x96xf32> to vector<2x32xf32>
    %202 = vector.broadcast %5 : vector<1x32xf32> to vector<2x32xf32>
    %203 = arith.addf %201, %202 : vector<2x32xf32>
    %204 = arith.mulf %191, %203 : vector<2x32xf32>
    %205 = arith.addf %200, %204 : vector<2x32xf32>
    %206 = math.tanh %205 : vector<2x32xf32>
    %cst_46 = arith.constant 1.000000e+00 : f32
    %207 = vector.broadcast %cst_46 : f32 to vector<2x32xf32>
    %208 = arith.subf %207, %199 : vector<2x32xf32>
    %209 = arith.mulf %208, %206 : vector<2x32xf32>
    %210 = arith.mulf %199, %143 : vector<2x32xf32>
    %211 = arith.addf %209, %210 : vector<2x32xf32>
    %c2 = arith.constant 2 : index
    %c0_47 = arith.constant 0 : index
    %c0_48 = arith.constant 0 : index
    %212 = vector.load %arg9[%c2, %c0_47, %c0_48] : memref<8x2x64xf32, #tpu.memory_space<vmem>>, vector<1x2x32xf32>
    %213 = vector.shape_cast %212 : vector<1x2x32xf32> to vector<2x32xf32>
    %214 = vector.shape_cast %181 : vector<2x32xf32> to vector<1x2x32xf32>
    tpu.vector_store %arg9[%c2, %c0_47, %c0_48], %214 {strides = array<i32>} : memref<8x2x64xf32, #tpu.memory_space<vmem>>, vector<1x2x32xf32>,
    %c5 = arith.constant 5 : index
    %c0_49 = arith.constant 0 : index
    %c32_50 = arith.constant 32 : index
    %215 = vector.load %arg9[%c5, %c0_49, %c32_50] : memref<8x2x64xf32, #tpu.memory_space<vmem>>, vector<1x2x32xf32>
    %216 = vector.shape_cast %215 : vector<1x2x32xf32> to vector<2x32xf32>
    %217 = vector.shape_cast %211 : vector<2x32xf32> to vector<1x2x32xf32>
    tpu.vector_store %arg9[%c5, %c0_49, %c32_50], %217 {strides = array<i32>} : memref<8x2x64xf32, #tpu.memory_space<vmem>>, vector<1x2x32xf32>,
    %218 = vector.extract_strided_slice %10 {offsets = [6, 0], sizes = [2, 96], strides = [1, 1]} : vector<16x96xf32> to vector<2x96xf32>
    %219 = vector.extract_strided_slice %11 {offsets = [8, 0], sizes = [2, 96], strides = [1, 1]} : vector<16x96xf32> to vector<2x96xf32>
    %220 = arith.truncf %181 : vector<2x32xf32> to vector<2x32xbf16>
    %cst_51 = arith.constant dense<0.000000e+00> : vector<2x96xf32>
    %221 = tpu.matmul %220, %2, %cst_51 {dimension_numbers = #tpu.dot_dimension_numbers<[1], [0], [0], [1], [0, 0, 1, 1], [], []>} : vector<2x32xbf16>, vector<32x96xbf16>, vector<2x96xf32> -> vector<2x96xf32>
    %222 = vector.extract_strided_slice %218 {offsets = [0, 0], sizes = [2, 32], strides = [1, 1]} : vector<2x96xf32> to vector<2x32xf32>
    %223 = vector.extract_strided_slice %221 {offsets = [0, 0], sizes = [2, 32], strides = [1, 1]} : vector<2x96xf32> to vector<2x32xf32>
    %224 = arith.addf %222, %223 : vector<2x32xf32>
    %225 = arith.negf %224 : vector<2x32xf32>
    %226 = math.exp %225 : vector<2x32xf32>
    %cst_52 = arith.constant 1.000000e+00 : f32
    %227 = vector.broadcast %cst_52 : f32 to vector<2x32xf32>
    %228 = arith.addf %227, %226 : vector<2x32xf32>
    %229 = arith.divf %227, %228 : vector<2x32xf32>
    %230 = vector.extract_strided_slice %218 {offsets = [0, 32], sizes = [2, 32], strides = [1, 1]} : vector<2x96xf32> to vector<2x32xf32>
    %231 = vector.extract_strided_slice %221 {offsets = [0, 32], sizes = [2, 32], strides = [1, 1]} : vector<2x96xf32> to vector<2x32xf32>
    %232 = arith.addf %230, %231 : vector<2x32xf32>
    %233 = arith.negf %232 : vector<2x32xf32>
    %234 = math.exp %233 : vector<2x32xf32>
    %cst_53 = arith.constant 1.000000e+00 : f32
    %235 = vector.broadcast %cst_53 : f32 to vector<2x32xf32>
    %236 = arith.addf %235, %234 : vector<2x32xf32>
    %237 = arith.divf %235, %236 : vector<2x32xf32>
    %238 = vector.extract_strided_slice %218 {offsets = [0, 64], sizes = [2, 32], strides = [1, 1]} : vector<2x96xf32> to vector<2x32xf32>
    %239 = vector.extract_strided_slice %221 {offsets = [0, 64], sizes = [2, 32], strides = [1, 1]} : vector<2x96xf32> to vector<2x32xf32>
    %240 = vector.broadcast %4 : vector<1x32xf32> to vector<2x32xf32>
    %241 = arith.addf %239, %240 : vector<2x32xf32>
    %242 = arith.mulf %229, %241 : vector<2x32xf32>
    %243 = arith.addf %238, %242 : vector<2x32xf32>
    %244 = math.tanh %243 : vector<2x32xf32>
    %cst_54 = arith.constant 1.000000e+00 : f32
    %245 = vector.broadcast %cst_54 : f32 to vector<2x32xf32>
    %246 = arith.subf %245, %237 : vector<2x32xf32>
    %247 = arith.mulf %246, %244 : vector<2x32xf32>
    %248 = arith.mulf %237, %181 : vector<2x32xf32>
    %249 = arith.addf %247, %248 : vector<2x32xf32>
    %250 = arith.truncf %211 : vector<2x32xf32> to vector<2x32xbf16>
    %cst_55 = arith.constant dense<0.000000e+00> : vector<2x96xf32>
    %251 = tpu.matmul %250, %3, %cst_55 {dimension_numbers = #tpu.dot_dimension_numbers<[1], [0], [0], [1], [0, 0, 1, 1], [], []>} : vector<2x32xbf16>, vector<32x96xbf16>, vector<2x96xf32> -> vector<2x96xf32>
    %252 = vector.extract_strided_slice %219 {offsets = [0, 0], sizes = [2, 32], strides = [1, 1]} : vector<2x96xf32> to vector<2x32xf32>
    %253 = vector.extract_strided_slice %251 {offsets = [0, 0], sizes = [2, 32], strides = [1, 1]} : vector<2x96xf32> to vector<2x32xf32>
    %254 = arith.addf %252, %253 : vector<2x32xf32>
    %255 = arith.negf %254 : vector<2x32xf32>
    %256 = math.exp %255 : vector<2x32xf32>
    %cst_56 = arith.constant 1.000000e+00 : f32
    %257 = vector.broadcast %cst_56 : f32 to vector<2x32xf32>
    %258 = arith.addf %257, %256 : vector<2x32xf32>
    %259 = arith.divf %257, %258 : vector<2x32xf32>
    %260 = vector.extract_strided_slice %219 {offsets = [0, 32], sizes = [2, 32], strides = [1, 1]} : vector<2x96xf32> to vector<2x32xf32>
    %261 = vector.extract_strided_slice %251 {offsets = [0, 32], sizes = [2, 32], strides = [1, 1]} : vector<2x96xf32> to vector<2x32xf32>
    %262 = arith.addf %260, %261 : vector<2x32xf32>
    %263 = arith.negf %262 : vector<2x32xf32>
    %264 = math.exp %263 : vector<2x32xf32>
    %cst_57 = arith.constant 1.000000e+00 : f32
    %265 = vector.broadcast %cst_57 : f32 to vector<2x32xf32>
    %266 = arith.addf %265, %264 : vector<2x32xf32>
    %267 = arith.divf %265, %266 : vector<2x32xf32>
    %268 = vector.extract_strided_slice %219 {offsets = [0, 64], sizes = [2, 32], strides = [1, 1]} : vector<2x96xf32> to vector<2x32xf32>
    %269 = vector.extract_strided_slice %251 {offsets = [0, 64], sizes = [2, 32], strides = [1, 1]} : vector<2x96xf32> to vector<2x32xf32>
    %270 = vector.broadcast %5 : vector<1x32xf32> to vector<2x32xf32>
    %271 = arith.addf %269, %270 : vector<2x32xf32>
    %272 = arith.mulf %259, %271 : vector<2x32xf32>
    %273 = arith.addf %268, %272 : vector<2x32xf32>
    %274 = math.tanh %273 : vector<2x32xf32>
    %cst_58 = arith.constant 1.000000e+00 : f32
    %275 = vector.broadcast %cst_58 : f32 to vector<2x32xf32>
    %276 = arith.subf %275, %267 : vector<2x32xf32>
    %277 = arith.mulf %276, %274 : vector<2x32xf32>
    %278 = arith.mulf %267, %211 : vector<2x32xf32>
    %279 = arith.addf %277, %278 : vector<2x32xf32>
    %c3 = arith.constant 3 : index
    %c0_59 = arith.constant 0 : index
    %c0_60 = arith.constant 0 : index
    %280 = vector.load %arg9[%c3, %c0_59, %c0_60] : memref<8x2x64xf32, #tpu.memory_space<vmem>>, vector<1x2x32xf32>
    %281 = vector.shape_cast %280 : vector<1x2x32xf32> to vector<2x32xf32>
    %282 = vector.shape_cast %249 : vector<2x32xf32> to vector<1x2x32xf32>
    tpu.vector_store %arg9[%c3, %c0_59, %c0_60], %282 {strides = array<i32>} : memref<8x2x64xf32, #tpu.memory_space<vmem>>, vector<1x2x32xf32>,
    %c4 = arith.constant 4 : index
    %c0_61 = arith.constant 0 : index
    %c32_62 = arith.constant 32 : index
    %283 = vector.load %arg9[%c4, %c0_61, %c32_62] : memref<8x2x64xf32, #tpu.memory_space<vmem>>, vector<1x2x32xf32>
    %284 = vector.shape_cast %283 : vector<1x2x32xf32> to vector<2x32xf32>
    %285 = vector.shape_cast %279 : vector<2x32xf32> to vector<1x2x32xf32>
    tpu.vector_store %arg9[%c4, %c0_61, %c32_62], %285 {strides = array<i32>} : memref<8x2x64xf32, #tpu.memory_space<vmem>>, vector<1x2x32xf32>,
    %286 = vector.extract_strided_slice %10 {offsets = [8, 0], sizes = [2, 96], strides = [1, 1]} : vector<16x96xf32> to vector<2x96xf32>
    %287 = vector.extract_strided_slice %11 {offsets = [6, 0], sizes = [2, 96], strides = [1, 1]} : vector<16x96xf32> to vector<2x96xf32>
    %288 = arith.truncf %249 : vector<2x32xf32> to vector<2x32xbf16>
    %cst_63 = arith.constant dense<0.000000e+00> : vector<2x96xf32>
    %289 = tpu.matmul %288, %2, %cst_63 {dimension_numbers = #tpu.dot_dimension_numbers<[1], [0], [0], [1], [0, 0, 1, 1], [], []>} : vector<2x32xbf16>, vector<32x96xbf16>, vector<2x96xf32> -> vector<2x96xf32>
    %290 = vector.extract_strided_slice %286 {offsets = [0, 0], sizes = [2, 32], strides = [1, 1]} : vector<2x96xf32> to vector<2x32xf32>
    %291 = vector.extract_strided_slice %289 {offsets = [0, 0], sizes = [2, 32], strides = [1, 1]} : vector<2x96xf32> to vector<2x32xf32>
    %292 = arith.addf %290, %291 : vector<2x32xf32>
    %293 = arith.negf %292 : vector<2x32xf32>
    %294 = math.exp %293 : vector<2x32xf32>
    %cst_64 = arith.constant 1.000000e+00 : f32
    %295 = vector.broadcast %cst_64 : f32 to vector<2x32xf32>
    %296 = arith.addf %295, %294 : vector<2x32xf32>
    %297 = arith.divf %295, %296 : vector<2x32xf32>
    %298 = vector.extract_strided_slice %286 {offsets = [0, 32], sizes = [2, 32], strides = [1, 1]} : vector<2x96xf32> to vector<2x32xf32>
    %299 = vector.extract_strided_slice %289 {offsets = [0, 32], sizes = [2, 32], strides = [1, 1]} : vector<2x96xf32> to vector<2x32xf32>
    %300 = arith.addf %298, %299 : vector<2x32xf32>
    %301 = arith.negf %300 : vector<2x32xf32>
    %302 = math.exp %301 : vector<2x32xf32>
    %cst_65 = arith.constant 1.000000e+00 : f32
    %303 = vector.broadcast %cst_65 : f32 to vector<2x32xf32>
    %304 = arith.addf %303, %302 : vector<2x32xf32>
    %305 = arith.divf %303, %304 : vector<2x32xf32>
    %306 = vector.extract_strided_slice %286 {offsets = [0, 64], sizes = [2, 32], strides = [1, 1]} : vector<2x96xf32> to vector<2x32xf32>
    %307 = vector.extract_strided_slice %289 {offsets = [0, 64], sizes = [2, 32], strides = [1, 1]} : vector<2x96xf32> to vector<2x32xf32>
    %308 = vector.broadcast %4 : vector<1x32xf32> to vector<2x32xf32>
    %309 = arith.addf %307, %308 : vector<2x32xf32>
    %310 = arith.mulf %297, %309 : vector<2x32xf32>
    %311 = arith.addf %306, %310 : vector<2x32xf32>
    %312 = math.tanh %311 : vector<2x32xf32>
    %cst_66 = arith.constant 1.000000e+00 : f32
    %313 = vector.broadcast %cst_66 : f32 to vector<2x32xf32>
    %314 = arith.subf %313, %305 : vector<2x32xf32>
    %315 = arith.mulf %314, %312 : vector<2x32xf32>
    %316 = arith.mulf %305, %249 : vector<2x32xf32>
    %317 = arith.addf %315, %316 : vector<2x32xf32>
    %318 = arith.truncf %279 : vector<2x32xf32> to vector<2x32xbf16>
    %cst_67 = arith.constant dense<0.000000e+00> : vector<2x96xf32>
    %319 = tpu.matmul %318, %3, %cst_67 {dimension_numbers = #tpu.dot_dimension_numbers<[1], [0], [0], [1], [0, 0, 1, 1], [], []>} : vector<2x32xbf16>, vector<32x96xbf16>, vector<2x96xf32> -> vector<2x96xf32>
    %320 = vector.extract_strided_slice %287 {offsets = [0, 0], sizes = [2, 32], strides = [1, 1]} : vector<2x96xf32> to vector<2x32xf32>
    %321 = vector.extract_strided_slice %319 {offsets = [0, 0], sizes = [2, 32], strides = [1, 1]} : vector<2x96xf32> to vector<2x32xf32>
    %322 = arith.addf %320, %321 : vector<2x32xf32>
    %323 = arith.negf %322 : vector<2x32xf32>
    %324 = math.exp %323 : vector<2x32xf32>
    %cst_68 = arith.constant 1.000000e+00 : f32
    %325 = vector.broadcast %cst_68 : f32 to vector<2x32xf32>
    %326 = arith.addf %325, %324 : vector<2x32xf32>
    %327 = arith.divf %325, %326 : vector<2x32xf32>
    %328 = vector.extract_strided_slice %287 {offsets = [0, 32], sizes = [2, 32], strides = [1, 1]} : vector<2x96xf32> to vector<2x32xf32>
    %329 = vector.extract_strided_slice %319 {offsets = [0, 32], sizes = [2, 32], strides = [1, 1]} : vector<2x96xf32> to vector<2x32xf32>
    %330 = arith.addf %328, %329 : vector<2x32xf32>
    %331 = arith.negf %330 : vector<2x32xf32>
    %332 = math.exp %331 : vector<2x32xf32>
    %cst_69 = arith.constant 1.000000e+00 : f32
    %333 = vector.broadcast %cst_69 : f32 to vector<2x32xf32>
    %334 = arith.addf %333, %332 : vector<2x32xf32>
    %335 = arith.divf %333, %334 : vector<2x32xf32>
    %336 = vector.extract_strided_slice %287 {offsets = [0, 64], sizes = [2, 32], strides = [1, 1]} : vector<2x96xf32> to vector<2x32xf32>
    %337 = vector.extract_strided_slice %319 {offsets = [0, 64], sizes = [2, 32], strides = [1, 1]} : vector<2x96xf32> to vector<2x32xf32>
    %338 = vector.broadcast %5 : vector<1x32xf32> to vector<2x32xf32>
    %339 = arith.addf %337, %338 : vector<2x32xf32>
    %340 = arith.mulf %327, %339 : vector<2x32xf32>
    %341 = arith.addf %336, %340 : vector<2x32xf32>
    %342 = math.tanh %341 : vector<2x32xf32>
    %cst_70 = arith.constant 1.000000e+00 : f32
    %343 = vector.broadcast %cst_70 : f32 to vector<2x32xf32>
    %344 = arith.subf %343, %335 : vector<2x32xf32>
    %345 = arith.mulf %344, %342 : vector<2x32xf32>
    %346 = arith.mulf %335, %279 : vector<2x32xf32>
    %347 = arith.addf %345, %346 : vector<2x32xf32>
    %c4_71 = arith.constant 4 : index
    %c0_72 = arith.constant 0 : index
    %c0_73 = arith.constant 0 : index
    %348 = vector.load %arg9[%c4_71, %c0_72, %c0_73] : memref<8x2x64xf32, #tpu.memory_space<vmem>>, vector<1x2x32xf32>
    %349 = vector.shape_cast %348 : vector<1x2x32xf32> to vector<2x32xf32>
    %350 = vector.shape_cast %317 : vector<2x32xf32> to vector<1x2x32xf32>
    tpu.vector_store %arg9[%c4_71, %c0_72, %c0_73], %350 {strides = array<i32>} : memref<8x2x64xf32, #tpu.memory_space<vmem>>, vector<1x2x32xf32>,
    %c3_74 = arith.constant 3 : index
    %c0_75 = arith.constant 0 : index
    %c32_76 = arith.constant 32 : index
    %351 = vector.load %arg9[%c3_74, %c0_75, %c32_76] : memref<8x2x64xf32, #tpu.memory_space<vmem>>, vector<1x2x32xf32>
    %352 = vector.shape_cast %351 : vector<1x2x32xf32> to vector<2x32xf32>
    %353 = vector.shape_cast %347 : vector<2x32xf32> to vector<1x2x32xf32>
    tpu.vector_store %arg9[%c3_74, %c0_75, %c32_76], %353 {strides = array<i32>} : memref<8x2x64xf32, #tpu.memory_space<vmem>>, vector<1x2x32xf32>,
    %354 = vector.extract_strided_slice %10 {offsets = [10, 0], sizes = [2, 96], strides = [1, 1]} : vector<16x96xf32> to vector<2x96xf32>
    %355 = vector.extract_strided_slice %11 {offsets = [4, 0], sizes = [2, 96], strides = [1, 1]} : vector<16x96xf32> to vector<2x96xf32>
    %356 = arith.truncf %317 : vector<2x32xf32> to vector<2x32xbf16>
    %cst_77 = arith.constant dense<0.000000e+00> : vector<2x96xf32>
    %357 = tpu.matmul %356, %2, %cst_77 {dimension_numbers = #tpu.dot_dimension_numbers<[1], [0], [0], [1], [0, 0, 1, 1], [], []>} : vector<2x32xbf16>, vector<32x96xbf16>, vector<2x96xf32> -> vector<2x96xf32>
    %358 = vector.extract_strided_slice %354 {offsets = [0, 0], sizes = [2, 32], strides = [1, 1]} : vector<2x96xf32> to vector<2x32xf32>
    %359 = vector.extract_strided_slice %357 {offsets = [0, 0], sizes = [2, 32], strides = [1, 1]} : vector<2x96xf32> to vector<2x32xf32>
    %360 = arith.addf %358, %359 : vector<2x32xf32>
    %361 = arith.negf %360 : vector<2x32xf32>
    %362 = math.exp %361 : vector<2x32xf32>
    %cst_78 = arith.constant 1.000000e+00 : f32
    %363 = vector.broadcast %cst_78 : f32 to vector<2x32xf32>
    %364 = arith.addf %363, %362 : vector<2x32xf32>
    %365 = arith.divf %363, %364 : vector<2x32xf32>
    %366 = vector.extract_strided_slice %354 {offsets = [0, 32], sizes = [2, 32], strides = [1, 1]} : vector<2x96xf32> to vector<2x32xf32>
    %367 = vector.extract_strided_slice %357 {offsets = [0, 32], sizes = [2, 32], strides = [1, 1]} : vector<2x96xf32> to vector<2x32xf32>
    %368 = arith.addf %366, %367 : vector<2x32xf32>
    %369 = arith.negf %368 : vector<2x32xf32>
    %370 = math.exp %369 : vector<2x32xf32>
    %cst_79 = arith.constant 1.000000e+00 : f32
    %371 = vector.broadcast %cst_79 : f32 to vector<2x32xf32>
    %372 = arith.addf %371, %370 : vector<2x32xf32>
    %373 = arith.divf %371, %372 : vector<2x32xf32>
    %374 = vector.extract_strided_slice %354 {offsets = [0, 64], sizes = [2, 32], strides = [1, 1]} : vector<2x96xf32> to vector<2x32xf32>
    %375 = vector.extract_strided_slice %357 {offsets = [0, 64], sizes = [2, 32], strides = [1, 1]} : vector<2x96xf32> to vector<2x32xf32>
    %376 = vector.broadcast %4 : vector<1x32xf32> to vector<2x32xf32>
    %377 = arith.addf %375, %376 : vector<2x32xf32>
    %378 = arith.mulf %365, %377 : vector<2x32xf32>
    %379 = arith.addf %374, %378 : vector<2x32xf32>
    %380 = math.tanh %379 : vector<2x32xf32>
    %cst_80 = arith.constant 1.000000e+00 : f32
    %381 = vector.broadcast %cst_80 : f32 to vector<2x32xf32>
    %382 = arith.subf %381, %373 : vector<2x32xf32>
    %383 = arith.mulf %382, %380 : vector<2x32xf32>
    %384 = arith.mulf %373, %317 : vector<2x32xf32>
    %385 = arith.addf %383, %384 : vector<2x32xf32>
    %386 = arith.truncf %347 : vector<2x32xf32> to vector<2x32xbf16>
    %cst_81 = arith.constant dense<0.000000e+00> : vector<2x96xf32>
    %387 = tpu.matmul %386, %3, %cst_81 {dimension_numbers = #tpu.dot_dimension_numbers<[1], [0], [0], [1], [0, 0, 1, 1], [], []>} : vector<2x32xbf16>, vector<32x96xbf16>, vector<2x96xf32> -> vector<2x96xf32>
    %388 = vector.extract_strided_slice %355 {offsets = [0, 0], sizes = [2, 32], strides = [1, 1]} : vector<2x96xf32> to vector<2x32xf32>
    %389 = vector.extract_strided_slice %387 {offsets = [0, 0], sizes = [2, 32], strides = [1, 1]} : vector<2x96xf32> to vector<2x32xf32>
    %390 = arith.addf %388, %389 : vector<2x32xf32>
    %391 = arith.negf %390 : vector<2x32xf32>
    %392 = math.exp %391 : vector<2x32xf32>
    %cst_82 = arith.constant 1.000000e+00 : f32
    %393 = vector.broadcast %cst_82 : f32 to vector<2x32xf32>
    %394 = arith.addf %393, %392 : vector<2x32xf32>
    %395 = arith.divf %393, %394 : vector<2x32xf32>
    %396 = vector.extract_strided_slice %355 {offsets = [0, 32], sizes = [2, 32], strides = [1, 1]} : vector<2x96xf32> to vector<2x32xf32>
    %397 = vector.extract_strided_slice %387 {offsets = [0, 32], sizes = [2, 32], strides = [1, 1]} : vector<2x96xf32> to vector<2x32xf32>
    %398 = arith.addf %396, %397 : vector<2x32xf32>
    %399 = arith.negf %398 : vector<2x32xf32>
    %400 = math.exp %399 : vector<2x32xf32>
    %cst_83 = arith.constant 1.000000e+00 : f32
    %401 = vector.broadcast %cst_83 : f32 to vector<2x32xf32>
    %402 = arith.addf %401, %400 : vector<2x32xf32>
    %403 = arith.divf %401, %402 : vector<2x32xf32>
    %404 = vector.extract_strided_slice %355 {offsets = [0, 64], sizes = [2, 32], strides = [1, 1]} : vector<2x96xf32> to vector<2x32xf32>
    %405 = vector.extract_strided_slice %387 {offsets = [0, 64], sizes = [2, 32], strides = [1, 1]} : vector<2x96xf32> to vector<2x32xf32>
    %406 = vector.broadcast %5 : vector<1x32xf32> to vector<2x32xf32>
    %407 = arith.addf %405, %406 : vector<2x32xf32>
    %408 = arith.mulf %395, %407 : vector<2x32xf32>
    %409 = arith.addf %404, %408 : vector<2x32xf32>
    %410 = math.tanh %409 : vector<2x32xf32>
    %cst_84 = arith.constant 1.000000e+00 : f32
    %411 = vector.broadcast %cst_84 : f32 to vector<2x32xf32>
    %412 = arith.subf %411, %403 : vector<2x32xf32>
    %413 = arith.mulf %412, %410 : vector<2x32xf32>
    %414 = arith.mulf %403, %347 : vector<2x32xf32>
    %415 = arith.addf %413, %414 : vector<2x32xf32>
    %c5_85 = arith.constant 5 : index
    %c0_86 = arith.constant 0 : index
    %c0_87 = arith.constant 0 : index
    %416 = vector.load %arg9[%c5_85, %c0_86, %c0_87] : memref<8x2x64xf32, #tpu.memory_space<vmem>>, vector<1x2x32xf32>
    %417 = vector.shape_cast %416 : vector<1x2x32xf32> to vector<2x32xf32>
    %418 = vector.shape_cast %385 : vector<2x32xf32> to vector<1x2x32xf32>
    tpu.vector_store %arg9[%c5_85, %c0_86, %c0_87], %418 {strides = array<i32>} : memref<8x2x64xf32, #tpu.memory_space<vmem>>, vector<1x2x32xf32>,
    %c2_88 = arith.constant 2 : index
    %c0_89 = arith.constant 0 : index
    %c32_90 = arith.constant 32 : index
    %419 = vector.load %arg9[%c2_88, %c0_89, %c32_90] : memref<8x2x64xf32, #tpu.memory_space<vmem>>, vector<1x2x32xf32>
    %420 = vector.shape_cast %419 : vector<1x2x32xf32> to vector<2x32xf32>
    %421 = vector.shape_cast %415 : vector<2x32xf32> to vector<1x2x32xf32>
    tpu.vector_store %arg9[%c2_88, %c0_89, %c32_90], %421 {strides = array<i32>} : memref<8x2x64xf32, #tpu.memory_space<vmem>>, vector<1x2x32xf32>,
    %422 = vector.extract_strided_slice %10 {offsets = [12, 0], sizes = [2, 96], strides = [1, 1]} : vector<16x96xf32> to vector<2x96xf32>
    %423 = vector.extract_strided_slice %11 {offsets = [2, 0], sizes = [2, 96], strides = [1, 1]} : vector<16x96xf32> to vector<2x96xf32>
    %424 = arith.truncf %385 : vector<2x32xf32> to vector<2x32xbf16>
    %cst_91 = arith.constant dense<0.000000e+00> : vector<2x96xf32>
    %425 = tpu.matmul %424, %2, %cst_91 {dimension_numbers = #tpu.dot_dimension_numbers<[1], [0], [0], [1], [0, 0, 1, 1], [], []>} : vector<2x32xbf16>, vector<32x96xbf16>, vector<2x96xf32> -> vector<2x96xf32>
    %426 = vector.extract_strided_slice %422 {offsets = [0, 0], sizes = [2, 32], strides = [1, 1]} : vector<2x96xf32> to vector<2x32xf32>
    %427 = vector.extract_strided_slice %425 {offsets = [0, 0], sizes = [2, 32], strides = [1, 1]} : vector<2x96xf32> to vector<2x32xf32>
    %428 = arith.addf %426, %427 : vector<2x32xf32>
    %429 = arith.negf %428 : vector<2x32xf32>
    %430 = math.exp %429 : vector<2x32xf32>
    %cst_92 = arith.constant 1.000000e+00 : f32
    %431 = vector.broadcast %cst_92 : f32 to vector<2x32xf32>
    %432 = arith.addf %431, %430 : vector<2x32xf32>
    %433 = arith.divf %431, %432 : vector<2x32xf32>
    %434 = vector.extract_strided_slice %422 {offsets = [0, 32], sizes = [2, 32], strides = [1, 1]} : vector<2x96xf32> to vector<2x32xf32>
    %435 = vector.extract_strided_slice %425 {offsets = [0, 32], sizes = [2, 32], strides = [1, 1]} : vector<2x96xf32> to vector<2x32xf32>
    %436 = arith.addf %434, %435 : vector<2x32xf32>
    %437 = arith.negf %436 : vector<2x32xf32>
    %438 = math.exp %437 : vector<2x32xf32>
    %cst_93 = arith.constant 1.000000e+00 : f32
    %439 = vector.broadcast %cst_93 : f32 to vector<2x32xf32>
    %440 = arith.addf %439, %438 : vector<2x32xf32>
    %441 = arith.divf %439, %440 : vector<2x32xf32>
    %442 = vector.extract_strided_slice %422 {offsets = [0, 64], sizes = [2, 32], strides = [1, 1]} : vector<2x96xf32> to vector<2x32xf32>
    %443 = vector.extract_strided_slice %425 {offsets = [0, 64], sizes = [2, 32], strides = [1, 1]} : vector<2x96xf32> to vector<2x32xf32>
    %444 = vector.broadcast %4 : vector<1x32xf32> to vector<2x32xf32>
    %445 = arith.addf %443, %444 : vector<2x32xf32>
    %446 = arith.mulf %433, %445 : vector<2x32xf32>
    %447 = arith.addf %442, %446 : vector<2x32xf32>
    %448 = math.tanh %447 : vector<2x32xf32>
    %cst_94 = arith.constant 1.000000e+00 : f32
    %449 = vector.broadcast %cst_94 : f32 to vector<2x32xf32>
    %450 = arith.subf %449, %441 : vector<2x32xf32>
    %451 = arith.mulf %450, %448 : vector<2x32xf32>
    %452 = arith.mulf %441, %385 : vector<2x32xf32>
    %453 = arith.addf %451, %452 : vector<2x32xf32>
    %454 = arith.truncf %415 : vector<2x32xf32> to vector<2x32xbf16>
    %cst_95 = arith.constant dense<0.000000e+00> : vector<2x96xf32>
    %455 = tpu.matmul %454, %3, %cst_95 {dimension_numbers = #tpu.dot_dimension_numbers<[1], [0], [0], [1], [0, 0, 1, 1], [], []>} : vector<2x32xbf16>, vector<32x96xbf16>, vector<2x96xf32> -> vector<2x96xf32>
    %456 = vector.extract_strided_slice %423 {offsets = [0, 0], sizes = [2, 32], strides = [1, 1]} : vector<2x96xf32> to vector<2x32xf32>
    %457 = vector.extract_strided_slice %455 {offsets = [0, 0], sizes = [2, 32], strides = [1, 1]} : vector<2x96xf32> to vector<2x32xf32>
    %458 = arith.addf %456, %457 : vector<2x32xf32>
    %459 = arith.negf %458 : vector<2x32xf32>
    %460 = math.exp %459 : vector<2x32xf32>
    %cst_96 = arith.constant 1.000000e+00 : f32
    %461 = vector.broadcast %cst_96 : f32 to vector<2x32xf32>
    %462 = arith.addf %461, %460 : vector<2x32xf32>
    %463 = arith.divf %461, %462 : vector<2x32xf32>
    %464 = vector.extract_strided_slice %423 {offsets = [0, 32], sizes = [2, 32], strides = [1, 1]} : vector<2x96xf32> to vector<2x32xf32>
    %465 = vector.extract_strided_slice %455 {offsets = [0, 32], sizes = [2, 32], strides = [1, 1]} : vector<2x96xf32> to vector<2x32xf32>
    %466 = arith.addf %464, %465 : vector<2x32xf32>
    %467 = arith.negf %466 : vector<2x32xf32>
    %468 = math.exp %467 : vector<2x32xf32>
    %cst_97 = arith.constant 1.000000e+00 : f32
    %469 = vector.broadcast %cst_97 : f32 to vector<2x32xf32>
    %470 = arith.addf %469, %468 : vector<2x32xf32>
    %471 = arith.divf %469, %470 : vector<2x32xf32>
    %472 = vector.extract_strided_slice %423 {offsets = [0, 64], sizes = [2, 32], strides = [1, 1]} : vector<2x96xf32> to vector<2x32xf32>
    %473 = vector.extract_strided_slice %455 {offsets = [0, 64], sizes = [2, 32], strides = [1, 1]} : vector<2x96xf32> to vector<2x32xf32>
    %474 = vector.broadcast %5 : vector<1x32xf32> to vector<2x32xf32>
    %475 = arith.addf %473, %474 : vector<2x32xf32>
    %476 = arith.mulf %463, %475 : vector<2x32xf32>
    %477 = arith.addf %472, %476 : vector<2x32xf32>
    %478 = math.tanh %477 : vector<2x32xf32>
    %cst_98 = arith.constant 1.000000e+00 : f32
    %479 = vector.broadcast %cst_98 : f32 to vector<2x32xf32>
    %480 = arith.subf %479, %471 : vector<2x32xf32>
    %481 = arith.mulf %480, %478 : vector<2x32xf32>
    %482 = arith.mulf %471, %415 : vector<2x32xf32>
    %483 = arith.addf %481, %482 : vector<2x32xf32>
    %c6_99 = arith.constant 6 : index
    %c0_100 = arith.constant 0 : index
    %c0_101 = arith.constant 0 : index
    %484 = vector.load %arg9[%c6_99, %c0_100, %c0_101] : memref<8x2x64xf32, #tpu.memory_space<vmem>>, vector<1x2x32xf32>
    %485 = vector.shape_cast %484 : vector<1x2x32xf32> to vector<2x32xf32>
    %486 = vector.shape_cast %453 : vector<2x32xf32> to vector<1x2x32xf32>
    tpu.vector_store %arg9[%c6_99, %c0_100, %c0_101], %486 {strides = array<i32>} : memref<8x2x64xf32, #tpu.memory_space<vmem>>, vector<1x2x32xf32>,
    %c1_102 = arith.constant 1 : index
    %c0_103 = arith.constant 0 : index
    %c32_104 = arith.constant 32 : index
    %487 = vector.load %arg9[%c1_102, %c0_103, %c32_104] : memref<8x2x64xf32, #tpu.memory_space<vmem>>, vector<1x2x32xf32>
    %488 = vector.shape_cast %487 : vector<1x2x32xf32> to vector<2x32xf32>
    %489 = vector.shape_cast %483 : vector<2x32xf32> to vector<1x2x32xf32>
    tpu.vector_store %arg9[%c1_102, %c0_103, %c32_104], %489 {strides = array<i32>} : memref<8x2x64xf32, #tpu.memory_space<vmem>>, vector<1x2x32xf32>,
    %490 = vector.extract_strided_slice %10 {offsets = [14, 0], sizes = [2, 96], strides = [1, 1]} : vector<16x96xf32> to vector<2x96xf32>
    %491 = vector.extract_strided_slice %11 {offsets = [0, 0], sizes = [2, 96], strides = [1, 1]} : vector<16x96xf32> to vector<2x96xf32>
    %492 = arith.truncf %453 : vector<2x32xf32> to vector<2x32xbf16>
    %cst_105 = arith.constant dense<0.000000e+00> : vector<2x96xf32>
    %493 = tpu.matmul %492, %2, %cst_105 {dimension_numbers = #tpu.dot_dimension_numbers<[1], [0], [0], [1], [0, 0, 1, 1], [], []>} : vector<2x32xbf16>, vector<32x96xbf16>, vector<2x96xf32> -> vector<2x96xf32>
    %494 = vector.extract_strided_slice %490 {offsets = [0, 0], sizes = [2, 32], strides = [1, 1]} : vector<2x96xf32> to vector<2x32xf32>
    %495 = vector.extract_strided_slice %493 {offsets = [0, 0], sizes = [2, 32], strides = [1, 1]} : vector<2x96xf32> to vector<2x32xf32>
    %496 = arith.addf %494, %495 : vector<2x32xf32>
    %497 = arith.negf %496 : vector<2x32xf32>
    %498 = math.exp %497 : vector<2x32xf32>
    %cst_106 = arith.constant 1.000000e+00 : f32
    %499 = vector.broadcast %cst_106 : f32 to vector<2x32xf32>
    %500 = arith.addf %499, %498 : vector<2x32xf32>
    %501 = arith.divf %499, %500 : vector<2x32xf32>
    %502 = vector.extract_strided_slice %490 {offsets = [0, 32], sizes = [2, 32], strides = [1, 1]} : vector<2x96xf32> to vector<2x32xf32>
    %503 = vector.extract_strided_slice %493 {offsets = [0, 32], sizes = [2, 32], strides = [1, 1]} : vector<2x96xf32> to vector<2x32xf32>
    %504 = arith.addf %502, %503 : vector<2x32xf32>
    %505 = arith.negf %504 : vector<2x32xf32>
    %506 = math.exp %505 : vector<2x32xf32>
    %cst_107 = arith.constant 1.000000e+00 : f32
    %507 = vector.broadcast %cst_107 : f32 to vector<2x32xf32>
    %508 = arith.addf %507, %506 : vector<2x32xf32>
    %509 = arith.divf %507, %508 : vector<2x32xf32>
    %510 = vector.extract_strided_slice %490 {offsets = [0, 64], sizes = [2, 32], strides = [1, 1]} : vector<2x96xf32> to vector<2x32xf32>
    %511 = vector.extract_strided_slice %493 {offsets = [0, 64], sizes = [2, 32], strides = [1, 1]} : vector<2x96xf32> to vector<2x32xf32>
    %512 = vector.broadcast %4 : vector<1x32xf32> to vector<2x32xf32>
    %513 = arith.addf %511, %512 : vector<2x32xf32>
    %514 = arith.mulf %501, %513 : vector<2x32xf32>
    %515 = arith.addf %510, %514 : vector<2x32xf32>
    %516 = math.tanh %515 : vector<2x32xf32>
    %cst_108 = arith.constant 1.000000e+00 : f32
    %517 = vector.broadcast %cst_108 : f32 to vector<2x32xf32>
    %518 = arith.subf %517, %509 : vector<2x32xf32>
    %519 = arith.mulf %518, %516 : vector<2x32xf32>
    %520 = arith.mulf %509, %453 : vector<2x32xf32>
    %521 = arith.addf %519, %520 : vector<2x32xf32>
    %522 = arith.truncf %483 : vector<2x32xf32> to vector<2x32xbf16>
    %cst_109 = arith.constant dense<0.000000e+00> : vector<2x96xf32>
    %523 = tpu.matmul %522, %3, %cst_109 {dimension_numbers = #tpu.dot_dimension_numbers<[1], [0], [0], [1], [0, 0, 1, 1], [], []>} : vector<2x32xbf16>, vector<32x96xbf16>, vector<2x96xf32> -> vector<2x96xf32>
    %524 = vector.extract_strided_slice %491 {offsets = [0, 0], sizes = [2, 32], strides = [1, 1]} : vector<2x96xf32> to vector<2x32xf32>
    %525 = vector.extract_strided_slice %523 {offsets = [0, 0], sizes = [2, 32], strides = [1, 1]} : vector<2x96xf32> to vector<2x32xf32>
    %526 = arith.addf %524, %525 : vector<2x32xf32>
    %527 = arith.negf %526 : vector<2x32xf32>
    %528 = math.exp %527 : vector<2x32xf32>
    %cst_110 = arith.constant 1.000000e+00 : f32
    %529 = vector.broadcast %cst_110 : f32 to vector<2x32xf32>
    %530 = arith.addf %529, %528 : vector<2x32xf32>
    %531 = arith.divf %529, %530 : vector<2x32xf32>
    %532 = vector.extract_strided_slice %491 {offsets = [0, 32], sizes = [2, 32], strides = [1, 1]} : vector<2x96xf32> to vector<2x32xf32>
    %533 = vector.extract_strided_slice %523 {offsets = [0, 32], sizes = [2, 32], strides = [1, 1]} : vector<2x96xf32> to vector<2x32xf32>
    %534 = arith.addf %532, %533 : vector<2x32xf32>
    %535 = arith.negf %534 : vector<2x32xf32>
    %536 = math.exp %535 : vector<2x32xf32>
    %cst_111 = arith.constant 1.000000e+00 : f32
    %537 = vector.broadcast %cst_111 : f32 to vector<2x32xf32>
    %538 = arith.addf %537, %536 : vector<2x32xf32>
    %539 = arith.divf %537, %538 : vector<2x32xf32>
    %540 = vector.extract_strided_slice %491 {offsets = [0, 64], sizes = [2, 32], strides = [1, 1]} : vector<2x96xf32> to vector<2x32xf32>
    %541 = vector.extract_strided_slice %523 {offsets = [0, 64], sizes = [2, 32], strides = [1, 1]} : vector<2x96xf32> to vector<2x32xf32>
    %542 = vector.broadcast %5 : vector<1x32xf32> to vector<2x32xf32>
    %543 = arith.addf %541, %542 : vector<2x32xf32>
    %544 = arith.mulf %531, %543 : vector<2x32xf32>
    %545 = arith.addf %540, %544 : vector<2x32xf32>
    %546 = math.tanh %545 : vector<2x32xf32>
    %cst_112 = arith.constant 1.000000e+00 : f32
    %547 = vector.broadcast %cst_112 : f32 to vector<2x32xf32>
    %548 = arith.subf %547, %539 : vector<2x32xf32>
    %549 = arith.mulf %548, %546 : vector<2x32xf32>
    %550 = arith.mulf %539, %483 : vector<2x32xf32>
    %551 = arith.addf %549, %550 : vector<2x32xf32>
    %c7_113 = arith.constant 7 : index
    %c0_114 = arith.constant 0 : index
    %c0_115 = arith.constant 0 : index
    %552 = vector.load %arg9[%c7_113, %c0_114, %c0_115] : memref<8x2x64xf32, #tpu.memory_space<vmem>>, vector<1x2x32xf32>
    %553 = vector.shape_cast %552 : vector<1x2x32xf32> to vector<2x32xf32>
    %554 = vector.shape_cast %521 : vector<2x32xf32> to vector<1x2x32xf32>
    tpu.vector_store %arg9[%c7_113, %c0_114, %c0_115], %554 {strides = array<i32>} : memref<8x2x64xf32, #tpu.memory_space<vmem>>, vector<1x2x32xf32>,
    %c0_116 = arith.constant 0 : index
    %c0_117 = arith.constant 0 : index
    %c32_118 = arith.constant 32 : index
    %555 = vector.load %arg9[%c0_116, %c0_117, %c32_118] : memref<8x2x64xf32, #tpu.memory_space<vmem>>, vector<1x2x32xf32>
    %556 = vector.shape_cast %555 : vector<1x2x32xf32> to vector<2x32xf32>
    %557 = vector.shape_cast %551 : vector<2x32xf32> to vector<1x2x32xf32>
    tpu.vector_store %arg9[%c0_116, %c0_117, %c32_118], %557 {strides = array<i32>} : memref<8x2x64xf32, #tpu.memory_space<vmem>>, vector<1x2x32xf32>,
    %558 = arith.truncf %521 : vector<2x32xf32> to vector<2x32xbf16>
    %c0_119 = arith.constant 0 : index
    %c0_120 = arith.constant 0 : index
    %559 = vector.load %arg7[%c0_119, %c0_120] : memref<64x32xbf16, #tpu.memory_space<vmem>>, vector<32x32xbf16>
    %cst_121 = arith.constant dense<0.000000e+00> : vector<2x32xf32>
    %560 = tpu.matmul %558, %559, %cst_121 {dimension_numbers = #tpu.dot_dimension_numbers<[1], [0], [0], [1], [0, 0, 1, 1], [], []>} : vector<2x32xbf16>, vector<32x32xbf16>, vector<2x32xf32> -> vector<2x32xf32>
    %561 = arith.truncf %551 : vector<2x32xf32> to vector<2x32xbf16>
    %c32_122 = arith.constant 32 : index
    %c0_123 = arith.constant 0 : index
    %562 = vector.load %arg7[%c32_122, %c0_123] : memref<64x32xbf16, #tpu.memory_space<vmem>>, vector<32x32xbf16>
    %cst_124 = arith.constant dense<0.000000e+00> : vector<2x32xf32>
    %563 = tpu.matmul %561, %562, %cst_124 {dimension_numbers = #tpu.dot_dimension_numbers<[1], [0], [0], [1], [0, 0, 1, 1], [], []>} : vector<2x32xbf16>, vector<32x32xbf16>, vector<2x32xf32> -> vector<2x32xf32>
    %564 = arith.addf %560, %563 : vector<2x32xf32>
    %c0_125 = arith.constant 0 : index
    %c0_126 = arith.constant 0 : index
    %565 = vector.load %arg8[%c0_125, %c0_126] : memref<1x32xf32, #tpu.memory_space<vmem>>, vector<1x32xf32>
    %566 = vector.broadcast %565 : vector<1x32xf32> to vector<2x32xf32>
    %567 = arith.addf %564, %566 : vector<2x32xf32>
    %568 = math.tanh %567 : vector<2x32xf32>
    %c0_127 = arith.constant 0 : index
    %c0_128 = arith.constant 0 : index
    %569 = vector.load %arg10[%c0_127, %c0_128] : memref<2x32xf32, #tpu.memory_space<vmem>>, vector<2x32xf32>
    tpu.vector_store %arg10[%c0_127, %c0_128], %568 {strides = array<i32>} : memref<2x32xf32, #tpu.memory_space<vmem>>, vector<2x32xf32>,
    return
  }
}

</mosaic_0001>

<bundles_post_ra>
// kernel: encoder_forward.1
= control target key start
LH: loop header
LB: loop body
LE: loop exit
PB: predicated region body
PF: predicated region fallthrough
CT: control target
= control target key end

     0   :  { %16 = vsyncpa [#allocation3], 0  ;;  %v2218_v1 = vmov 0.0   ;;  %vm2219_vm0 = vmmov 0   ;;  %v2220_v4 = vmov 0   ;;  %vm90_vm1 = vcmask 261120   ;;  %s2739_s0 = inlined_call_operand.vmem [shape: bf16[16,32], index: 0, kind: input, shape index: {}]   ;;  %s2740_s1 = inlined_call_operand.vmem [shape: bf16[32,192], index: 1, kind: input, shape index: {}]   ;;  %s2741_s2 = inlined_call_operand.vmem [shape: f32[1,192], index: 2, kind: input, shape index: {}]   ;;  %s2742_s3 = inlined_call_operand.vmem [shape: bf16[32,96], index: 3, kind: input, shape index: {}]   ;;  %s2743_s4 = inlined_call_operand.vmem [shape: bf16[32,96], index: 4, kind: input, shape index: {}]   ;;  %s2744_s5 = inlined_call_operand.vmem [shape: f32[1,32], index: 5, kind: input, shape index: {}]   ;;  %s2745_s6 = inlined_call_operand.vmem [shape: f32[1,32], index: 6, kind: input, shape index: {}]   ;;  %s2746_s7 = inlined_call_operand.vmem [shape: bf16[64,32], index: 7, kind: input, shape index: {}]   ;;  %s2747_s8 = inlined_call_operand.vmem [shape: f32[1,32], index: 8, kind: input, shape index: {}]   ;;  %s2748_s9 = inlined_call_operand.hbm [shape: f32[8,2,64], index: 9, kind: output, shape index: {0}]   ;;  %s2749_s10 = inlined_call_operand.hbm [shape: f32[2,32], index: 10, kind: output, shape index: {1}]  }
   0x1   :  { %v2021_v0 = vld [vmem:[%s2740_s1 + $0x4] ss:$8 sps:$4 sm:$0xff]   ;;  %1868 = vmatprep.subr.bf16.mxu1 %v2218_v1  ;;  %1872 = vmatprep.mubr.msk.bf16.mxu1 %vm2219_vm0, %v2218_v1  ;;  %v2024_v3 = vld [vmem:[%s2740_s1] ss:$8 sps:$4 sm:$0xff]   ;;  %v2025_v5 = vld [vmem:[%s2740_s1 + $0x14] ss:$8 sps:$4 sm:$0xff]  }
   0x2   :  { %v2289_v2 = vld [vmem:[%s2742_s3] sm:$0xff]   ;;  %94 = vmatprep.subr.bf16.mxu0 %v2021_v0  ;;  %126 = vmatprep.mubr.bf16.mxu0 %v2220_v4  ;;  %v2304_v6 = vld [vmem:[%s2742_s3 + $0x8] sm:$0xff]   ;;  %v2028_v7 = vld [vmem:[%s2740_s1 + $0x10] ss:$8 sps:$4 sm:$0xff]   ;;  %s2221_s29 = smov 64  }
   0x3   :  { %1869 = vmatpush3.bf16.msra.mxu1 %v2289_v2  ;;  %95 = vmatpush1.bf16.msra.mxu0 %v2024_v3  ;;  %v2029_v8 = vld [vmem:[%s2739_s0] sm:$0xff]  }
   0x4   :  { %1870 = vmatprep.subr.bf16.mxu1 %v2218_v1  ;;  %96 = vmatprep.subr.bf16.mxu0 %v2025_v5  ;;  %v1766_v9 = vld [vmem:[%s2744_s5] ss:$0 sm:$0xff] }
   0x5   :  { %204 = vrot.lane.b32.xlu0 %v1766_v9, %s2221_s29 }
   0x7   :  { %1871 = vmatpush3.bf16.msra.mxu1 %v2304_v6  ;;  %97 = vmatpush1.bf16.msra.mxu0 %v2028_v7 }
   0x8   :  { %1884 = vmatprep.subr.bf16.mxu1 %v2218_v1  ;;  %1876 = vmatprep.subr.bf16.mxu0 %v2218_v1 }
   0xa   :  { %1873 = vmatmul.mubr.bf16.vlgmr.msra.gmra.mrb[0].mxu1 %v2220_v4 }
   0xb   :  { %17 = vsyncpa [#allocation5], 0  ;;  %1762 = vmatmul.mubr.msk.bf16.vlgmr.msra.gmra.mrb[0].mxu0 %vm90_vm1, %v2029_v8  ;;  %1885 = vmatpush3.bf16.msra.mxu1 %v2289_v2  ;;  %v55_v10 = vlaneseq  ;;  %v41_v13 = vld [vmem:[%s2741_s2] sm:$0x3]  ;;  %v2340_v16 = vld [vmem:[%s2743_s4 + $0x8] sm:$0xff]   ;;  %s2222_s2 = smov 96  }
   0xc   :  { %1880 = vmatprep.mubr.msk.bf16.mxu0 %vm2219_vm0, %v2218_v1  ;;  %1886 = vmatprep.subr.bf16.mxu1 %v2218_v1  ;;  %v2334_v15 = vld [vmem:[%s2743_s4] sm:$0xff]   ;;  %vm331_vm2 = vcmask 254976   ;;  %vm513_vm3 = vcmask 257026   ;;  %vm696_vm4 = vcmask 259076   ;;  %vm877_vm5 = vcmask 261126  }
   0xd   :  { %1888 = vmatprep.mubr.msk.bf16.mxu1 %vm2219_vm0, %v2218_v1  ;;  %v56_v11 = vshrl.u32 %v55_v10, 7  ;;  %1877 = vmatpush3.bf16.msra.mxu0 %v2334_v15  ;;  %v1771_v47 = vld [vmem:[%s2745_s6] ss:$0 sm:$0xff]  ;;  %s2223_s6 = smov 32   ;;  %vm338_vm6 = vcmask 523526   ;;  %vm520_vm7 = vcmask 521476  }
   0xe   :  { %1878 = vmatprep.subr.bf16.mxu0 %v2218_v1  ;;  %vm703_vm8 = vcmask 519426   ;;  %vm884_vm9 = vcmask 517376  }
   0xf   :  { %1887 = vmatpush3.bf16.msra.mxu1 %v2304_v6  ;;  %v61_v12 = vsub.s32 1, %v56_v11  ;;  %v57_v18 = vsub.s32 0, %v56_v11 }
  0x10   :  { %1900 = vmatprep.subr.bf16.mxu1 %v2218_v1 }
  0x11   :  { %v62_v14 = vrot.slane %v41_v13, %v61_v12  ;;  %1879 = vmatpush3.bf16.msra.mxu0 %v2340_v16  ;;  %v58_v23 = vrot.slane %v41_v13, %v57_v18 }
  0x12   :  { %1892 = vmatprep.subr.bf16.mxu0 %v2218_v1 }
  0x14   :  { %1881 = vmatmul.mubr.bf16.vlgmr.msra.gmra.mrb[4].mxu0 %v2220_v4 }
  0x15   :  { %1893 = vmatpush3.bf16.msra.mxu0 %v2334_v15  ;;  %1896 = vmatprep.mubr.msk.bf16.mxu0 %vm2219_vm0, %v2218_v1 }
  0x16   :  { %1894 = vmatprep.subr.bf16.mxu0 %v2218_v1 }
  0x19   :  { %1895 = vmatpush3.bf16.msra.mxu0 %v2340_v16 }
  0x1a   :  { %1908 = vmatprep.subr.bf16.mxu0 %v2218_v1 }
  0x77   :  { %v2343_v17 = vpop.permute.xlu0 %204 }
  0xdd   :  { %v186_v19 = vpop.f32.mrb[0].mxu1 }
  0xde   :  { %v207_v20 = vadd.f32 %v2343_v17, %v186_v19  ;;  %v128_v21 = vpop.f32.mrb[0].mxu0  ;;  %v1874_v22 = vpop.f32.mrb[1].mxu1 }
  0xdf   :  { %v189_v24 = vpop.f32.mrb[2].mxu1  ;;  %v130_v25 = vpop.f32.mrb[1].mxu0  ;;  %v2361_v32 = vadd.f32 %v128_v21, %v58_v23 }
  0xe0   :  { %209 = vrot.lane.b32.xlu0 %v207_v20, %s2221_s29  ;;  %v1875_v26 = vpop.f32.mrb[3].mxu1  ;;  %v2352_v27 = vadd.f32 %v130_v25, %v62_v14  ;;  %v132_v28 = vpop.f32.mrb[2].mxu0 }
  0xe1   :  { %v2355_v29 = vadd.f32 %v132_v28, %v58_v23  ;;  %v134_v30 = vpop.f32.mrb[3].mxu0  ;;  %v192_v33 = vadd.f32 %v186_v19, %v2361_v32 }
  0xe2   :  { %v2357_v31 = vadd.f32 %v134_v30, %v62_v14 }
  0xe3   :  { %v1765_v34 = vmul.f32 -1.442695, %v192_v33 }
  0xe5   :  { %2036 = vpow2.f32 %v1765_v34 }
  0xe7   :  { %v273_v42 = vpop.f32.mrb[4].mxu0 }
  0xe8   :  { %v1882_v43 = vpop.f32.mrb[5].mxu0  ;;  %v280_v56 = vrot.slane %v273_v42, 2 }
  0xe9   :  { %v276_v44 = vpop.f32.mrb[6].mxu0 }
  0xea   :  { %v1883_v45 = vpop.f32.mrb[7].mxu0 }
  0xef   :  { %v2037_v35 = vpop.eup %2036 }
  0xf0   :  { %v196_v36 = vadd.f32 1.0, %v2037_v35 }
  0xf2   :  { %2038 = vrcp.f32 %v196_v36 }
  0xfc   :  { %v2039_v37 = vpop.eup %2038 }
  0xfd   :  { %v219_v48 = vsub.f32 1.0, %v2039_v37  ;;  %v225_v50 = vmul.f32 0.0, %v2039_v37 }
 0x152   :  { %v210_v38 = vpop.permute.xlu0 %209 }
 0x153   :  { %v212_v39 = vmul.f32 %v2039_v37, %v210_v38 }
 0x155   :  { %214 = vrot.lane.b32.xlu1 %v212_v39, %s2221_s29 }
 0x1c7   :  { %v215_v40 = vpop.permute.xlu1 %214 }
 0x1c8   :  { %v217_v41 = vadd.f32 %v215_v40, %v2361_v32 }
 0x1ca   :  { %2040 = vtanh.f32 %v217_v41 }
 0x1d4   :  { %v2041_v46 = vpop.eup %2040 }
 0x1d5   :  { %221 = vrot.lane.b32.xlu1 %v2041_v46, %s2222_s2 }
 0x1d9   :  { %303 = vrot.lane.b32.xlu1 %v1771_v47, %s2221_s29 }
 0x247   :  { %v222_v49 = vpop.permute.xlu1 %221 }
 0x248   :  { %v224_v51 = vmul.f32 %v222_v49, %v219_v48 }
 0x24a   :  { %v2371_v52 = vadd.f32 %v225_v50, %v224_v51 }
 0x24b   :  { %v2373_v53 = vpop.permute.xlu1 %303 }
 0x24c   :  { %v340_v54 = vpack.c.bf16 %v2371_v52, %v2371_v52  ;;  %v306_v55 = vadd.f32 %v2373_v53, %v273_v42  ;;  %v416_v51 = vrot.slane %v2371_v52, 6 }
 0x24e   :  { %342 = vrot.lane.b32.xlu0 %v340_v54, %s2222_s2  ;;  %v308_v57 = vrot.slane %v306_v55, 2 }
 0x250   :  { %309 = vrot.lane.b32.xlu1 %v308_v57, %s2223_s6 }
 0x252   :  { %281 = vrot.lane.b32.xlu0 %v280_v56, %s2222_s2 }
 0x2c0   :  { %v343_v58 = vpop.permute.xlu0 %342 }
 0x2c1   :  { %1889 = vmatmul.mubr.msk.bf16.vlgmr.msra.gmra.mrb[4].mxu1 %vm90_vm1, %v343_v58 }
 0x2c2   :  { %1901 = vmatpush3.bf16.msra.mxu1 %v2289_v2  ;;  %1904 = vmatprep.mubr.msk.bf16.mxu1 %vm2219_vm0, %v2218_v1  ;;  %v310_v0 = vpop.permute.xlu1 %309 }
 0x2c3   :  { %1902 = vmatprep.subr.bf16.mxu1 %v2218_v1 }
 0x2c4   :  { %v282_v59 = vpop.permute.xlu0 %281 }
 0x2c5   :  { %v284_v60 = vadd.f32 %v282_v59, %v2355_v29  ;;  %v291_v18 = vadd.f32 %v282_v59, %v2357_v31 }
 0x2c6   :  { %1903 = vmatpush3.bf16.msra.mxu1 %v2304_v6 }
 0x2c7   :  { %v1769_v61 = vmul.f32 -1.442695, %v284_v60  ;;  %1916 = vmatprep.subr.bf16.mxu1 %v2218_v1  ;;  %v1770_v19 = vmul.f32 -1.442695, %v291_v18 }
 0x2c9   :  { %2042 = vpow2.f32 %v1769_v61 }
 0x2d3   :  { %v2043_v62 = vpop.eup %2042 }
 0x2d4   :  { %v288_v63 = vadd.f32 1.0, %v2043_v62 }
 0x2d6   :  { %2044 = vrcp.f32 %v288_v63 }
 0x2e0   :  { %v2045_v3 = vpop.eup %2044 }
 0x2e1   :  { %v312_v4 = vmul.f32 %v2045_v3, %v310_v0 }
 0x2e3   :  { %314 = vrot.lane.b32.xlu0 %v312_v4, %s2221_s29 }
 0x355   :  { %v315_v5 = vpop.permute.xlu0 %314 }
 0x356   :  { %v317_v7 = vadd.f32 %v315_v5, %v2357_v31 }
 0x358   :  { %2046 = vtanh.f32 %v317_v7 }
 0x359   :  { %2048 = vpow2.f32 %v1770_v19 }
 0x362   :  { %v2047_v8 = vpop.eup %2046 }
 0x363   :  { %321 = vrot.lane.b32.xlu1 %v2047_v8, %s2222_s2  ;;  %v2049_v20 = vpop.eup %2048 }
 0x364   :  { %v295_v21 = vadd.f32 1.0, %v2049_v20 }
 0x366   :  { %2050 = vrcp.f32 %v295_v21 }
 0x370   :  { %v2051_v22 = vpop.eup %2050 }
 0x371   :  { %v319_v23 = vsub.f32 1.0, %v2051_v22  ;;  %v325_v25 = vmul.f32 0.0, %v2051_v22 }
 0x394   :  { %v381_v9 = vpop.f32.mrb[4].mxu1 }
 0x395   :  { %v397_v10 = vadd.f32 %v381_v9, %v2343_v17  ;;  %v1890_v11 = vpop.f32.mrb[5].mxu1  ;;  %v388_v34 = vrot.slane %v381_v9, 6 }
 0x396   :  { %v384_v12 = vpop.f32.mrb[6].mxu1 }
 0x397   :  { %v399_v13 = vrot.slane %v397_v10, 6  ;;  %v1891_v14 = vpop.f32.mrb[7].mxu1  ;;  %v390_v35 = vadd.f32 %v388_v34, %v2361_v32 }
 0x399   :  { %400 = vrot.lane.b32.xlu0 %v399_v13, %s2221_s29  ;;  %v1773_v36 = vmul.f32 -1.442695, %v390_v35 }
 0x39b   :  { %2052 = vpow2.f32 %v1773_v36 }
 0x3a5   :  { %v2053_v37 = vpop.eup %2052 }
 0x3a6   :  { %v394_v38 = vadd.f32 1.0, %v2053_v37 }
 0x3a8   :  { %2054 = vrcp.f32 %v394_v38 }
 0x3b2   :  { %v2055_v39 = vpop.eup %2054 }
 0x3b3   :  { %v410_v50 = vsub.f32 1.0, %v2055_v39  ;;  %v418_v55 = vmul.f32 %v2055_v39, %v416_v51 }
 0x3d5   :  { %v322_v24 = vpop.permute.xlu1 %321 }
 0x3d6   :  { %v324_v26 = vmul.f32 %v322_v24, %v319_v23 }
 0x3d8   :  { %v2395_v28 = vadd.f32 %v325_v25, %v324_v26 }
 0x3da   :  { %v420_v30 = vpack.c.bf16 %v2395_v28, %v2395_v28 }
 0x3dc   :  { %v422_v33 = vrot.slane %v420_v30, 3 }
 0x3de   :  { %1897 = vmatmul.mubr.msk.bf16.vlgmr.msra.gmra.mrb[8].mxu0 %vm90_vm1, %v422_v33  ;;  %v504_v33 = vrot.slane %v2395_v28, 2 }
 0x3df   :  { %1909 = vmatpush3.bf16.msra.mxu0 %v2334_v15  ;;  %1912 = vmatprep.mubr.msk.bf16.mxu0 %vm2219_vm0, %v2218_v1 }
 0x3e0   :  { %1910 = vmatprep.subr.bf16.mxu0 %v2218_v1 }
 0x3e3   :  { %1911 = vmatpush3.bf16.msra.mxu0 %v2340_v16 }
 0x3e4   :  { %1924 = vmatprep.subr.bf16.mxu0 %v2218_v1 }
 0x40b   :  { %v401_v40 = vpop.permute.xlu0 %400 }
 0x40c   :  { %v403_v41 = vmul.f32 %v2055_v39, %v401_v40 }
 0x40e   :  { %405 = vrot.lane.b32.xlu1 %v403_v41, %s2221_s29 }
 0x480   :  { %v406_v42 = vpop.permute.xlu1 %405 }
 0x481   :  { %v408_v43 = vadd.f32 %v406_v42, %v2361_v32 }
 0x483   :  { %2056 = vtanh.f32 %v408_v43 }
 0x48d   :  { %v2057_v44 = vpop.eup %2056 }
 0x48e   :  { %412 = vrot.lane.b32.xlu0 %v2057_v44, %s2222_s2 }
 0x4b1   :  { %v460_v45 = vpop.f32.mrb[8].mxu0 }
 0x4b2   :  { %v467_v46 = vrot.slane %v460_v45, 4  ;;  %v1898_v47 = vpop.f32.mrb[9].mxu0  ;;  %v485_v59 = vadd.f32 %v460_v45, %v2373_v53 }
 0x4b3   :  { %v463_v48 = vpop.f32.mrb[10].mxu0 }
 0x4b4   :  { %v1899_v49 = vpop.f32.mrb[11].mxu0  ;;  %468 = vrot.lane.b32.xlu0 %v467_v46, %s2222_s2  ;;  %v487_v61 = vrot.slane %v485_v59, 4 }
 0x500   :  { %v413_v54 = vpop.permute.xlu0 %412 }
 0x501   :  { %v415_v56 = vmul.f32 %v413_v54, %v410_v50 }
 0x503   :  { %v2412_v57 = vadd.f32 %v418_v55, %v415_v56 }
 0x505   :  { %v522_v58 = vpack.c.bf16 %v2412_v57, %v2412_v57 }
 0x507   :  { %v524_v60 = vrot.slane %v522_v58, 1 }
 0x509   :  { %525 = vrot.lane.b32.xlu1 %v524_v60, %s2222_s2 }
 0x50d   :  { %488 = vrot.lane.b32.xlu1 %v487_v61, %s2223_s6 }
 0x526   :  { %v469_v62 = vpop.permute.xlu0 %468 }
 0x527   :  { %v471_v63 = vadd.f32 %v469_v62, %v2355_v29  ;;  %v478_v13 = vadd.f32 %v469_v62, %v2357_v31  ;;  %v599_v62 = vrot.slane %v2412_v57, 6 }
 0x529   :  { %v1775_v0 = vmul.f32 -1.442695, %v471_v63  ;;  %v1776_v20 = vmul.f32 -1.442695, %v478_v13 }
 0x52b   :  { %2058 = vpow2.f32 %v1775_v0 }
 0x535   :  { %v2059_v3 = vpop.eup %2058 }
 0x536   :  { %v475_v4 = vadd.f32 1.0, %v2059_v3 }
 0x538   :  { %2060 = vrcp.f32 %v475_v4 }
 0x542   :  { %v2061_v7 = vpop.eup %2060 }
 0x57b   :  { %v526_v5 = vpop.permute.xlu1 %525 }
 0x57c   :  { %1905 = vmatmul.mubr.msk.bf16.vlgmr.msra.gmra.mrb[8].mxu1 %vm90_vm1, %v526_v5 }
 0x57d   :  { %1917 = vmatpush3.bf16.msra.mxu1 %v2289_v2  ;;  %1920 = vmatprep.mubr.msk.bf16.mxu1 %vm2219_vm0, %v2218_v1 }
 0x57e   :  { %1918 = vmatprep.subr.bf16.mxu1 %v2218_v1 }
 0x57f   :  { %v489_v8 = vpop.permute.xlu1 %488 }
 0x580   :  { %v491_v9 = vmul.f32 %v2061_v7, %v489_v8 }
 0x581   :  { %1919 = vmatpush3.bf16.msra.mxu1 %v2304_v6 }
 0x582   :  { %493 = vrot.lane.b32.xlu0 %v491_v9, %s2221_s29  ;;  %1932 = vmatprep.subr.bf16.mxu1 %v2218_v1 }
 0x5f4   :  { %v494_v10 = vpop.permute.xlu0 %493 }
 0x5f5   :  { %v496_v11 = vadd.f32 %v494_v10, %v2357_v31 }
 0x5f7   :  { %2062 = vtanh.f32 %v496_v11 }
 0x5f8   :  { %2064 = vpow2.f32 %v1776_v20 }
 0x601   :  { %v2063_v12 = vpop.eup %2062 }
 0x602   :  { %500 = vrot.lane.b32.xlu1 %v2063_v12, %s2222_s2  ;;  %v2065_v24 = vpop.eup %2064 }
 0x603   :  { %v482_v25 = vadd.f32 1.0, %v2065_v24 }
 0x605   :  { %2066 = vrcp.f32 %v482_v25 }
 0x60f   :  { %v2067_v26 = vpop.eup %2066 }
 0x610   :  { %v498_v30 = vsub.f32 1.0, %v2067_v26  ;;  %v506_v35 = vmul.f32 %v2067_v26, %v504_v33 }
 0x64f   :  { %v564_v14 = vpop.f32.mrb[8].mxu1 }
 0x650   :  { %v580_v18 = vadd.f32 %v564_v14, %v2343_v17  ;;  %v1906_v19 = vpop.f32.mrb[9].mxu1  ;;  %v571_v40 = vrot.slane %v564_v14, 4 }
 0x651   :  { %v567_v21 = vpop.f32.mrb[10].mxu1 }
 0x652   :  { %v582_v22 = vrot.slane %v580_v18, 4  ;;  %v1907_v23 = vpop.f32.mrb[11].mxu1  ;;  %v573_v41 = vadd.f32 %v571_v40, %v2361_v32 }
 0x654   :  { %583 = vrot.lane.b32.xlu0 %v582_v22, %s2221_s29  ;;  %v1778_v42 = vmul.f32 -1.442695, %v573_v41 }
 0x656   :  { %2068 = vpow2.f32 %v1778_v42 }
 0x660   :  { %v2069_v43 = vpop.eup %2068 }
 0x661   :  { %v577_v44 = vadd.f32 1.0, %v2069_v43 }
 0x663   :  { %2070 = vrcp.f32 %v577_v44 }
 0x66d   :  { %v2071_v45 = vpop.eup %2070 }
 0x66e   :  { %v593_v61 = vsub.f32 1.0, %v2071_v45  ;;  %v601_v0 = vmul.f32 %v2071_v45, %v599_v62 }
 0x674   :  { %v501_v34 = vpop.permute.xlu1 %500 }
 0x675   :  { %v503_v36 = vmul.f32 %v501_v34, %v498_v30 }
 0x677   :  { %v2434_v37 = vadd.f32 %v506_v35, %v503_v36 }
 0x679   :  { %v603_v38 = vpack.c.bf16 %v2434_v37, %v2434_v37  ;;  %v687_v34 = vrot.slane %v2434_v37, 2 }
 0x67b   :  { %v605_v39 = vrot.slane %v603_v38, 2 }
 0x67d   :  { %1913 = vmatmul.mubr.msk.bf16.vlgmr.msra.gmra.mrb[12].mxu0 %vm90_vm1, %v605_v39 }
 0x67e   :  { %1925 = vmatpush3.bf16.msra.mxu0 %v2334_v15  ;;  %1928 = vmatprep.mubr.msk.bf16.mxu0 %vm2219_vm0, %v2218_v1 }
 0x67f   :  { %1926 = vmatprep.subr.bf16.mxu0 %v2218_v1 }
 0x682   :  { %1927 = vmatpush3.bf16.msra.mxu0 %v2340_v16 }
 0x683   :  { %1940 = vmatprep.subr.bf16.mxu0 %v2218_v1 }
 0x6c6   :  { %v584_v46 = vpop.permute.xlu0 %583 }
 0x6c7   :  { %v586_v47 = vmul.f32 %v2071_v45, %v584_v46 }
 0x6c9   :  { %588 = vrot.lane.b32.xlu1 %v586_v47, %s2221_s29 }
 0x73b   :  { %v589_v48 = vpop.permute.xlu1 %588 }
 0x73c   :  { %v591_v49 = vadd.f32 %v589_v48, %v2361_v32 }
 0x73e   :  { %2072 = vtanh.f32 %v591_v49 }
 0x748   :  { %v2073_v50 = vpop.eup %2072 }
 0x749   :  { %595 = vrot.lane.b32.xlu0 %v2073_v50, %s2222_s2 }
 0x750   :  { %v643_v51 = vpop.f32.mrb[12].mxu0 }
 0x751   :  { %v650_v54 = vrot.slane %v643_v51, 6  ;;  %v668_v55 = vadd.f32 %v643_v51, %v2373_v53  ;;  %v1914_v56 = vpop.f32.mrb[13].mxu0 }
 0x752   :  { %v646_v58 = vpop.f32.mrb[14].mxu0 }
 0x753   :  { %v1915_v59 = vpop.f32.mrb[15].mxu0  ;;  %651 = vrot.lane.b32.xlu1 %v650_v54, %s2222_s2  ;;  %v670_v60 = vrot.slane %v668_v55, 6 }
 0x757   :  { %671 = vrot.lane.b32.xlu1 %v670_v60, %s2223_s6 }
 0x7bb   :  { %v596_v63 = vpop.permute.xlu0 %595 }
 0x7bc   :  { %v598_v3 = vmul.f32 %v596_v63, %v593_v61 }
 0x7be   :  { %v2453_v4 = vadd.f32 %v601_v0, %v598_v3 }
 0x7c0   :  { %v705_v5 = vpack.c.bf16 %v2453_v4, %v2453_v4 }
 0x7c2   :  { %v707_v7 = vrot.slane %v705_v5, 2 }
 0x7c4   :  { %708 = vrot.lane.b32.xlu0 %v707_v7, %s2222_s2 }
 0x7c5   :  { %v652_v8 = vpop.permute.xlu1 %651 }
 0x7c6   :  { %v654_v9 = vadd.f32 %v652_v8, %v2355_v29  ;;  %v661_v23 = vadd.f32 %v652_v8, %v2357_v31 }
 0x7c8   :  { %v1780_v10 = vmul.f32 -1.442695, %v654_v9  ;;  %v1781_v24 = vmul.f32 -1.442695, %v661_v23 }
 0x7c9   :  { %v672_v14 = vpop.permute.xlu1 %671 }
 0x7ca   :  { %2074 = vpow2.f32 %v1780_v10 }
 0x7d4   :  { %v2075_v11 = vpop.eup %2074 }
 0x7d5   :  { %v658_v12 = vadd.f32 1.0, %v2075_v11 }
 0x7d7   :  { %2076 = vrcp.f32 %v658_v12 }
 0x7e1   :  { %v2077_v13 = vpop.eup %2076 }
 0x7e2   :  { %v674_v18 = vmul.f32 %v2077_v13, %v672_v14  ;;  %v782_v13 = vrot.slane %v2453_v4, 6 }
 0x7e4   :  { %676 = vrot.lane.b32.xlu0 %v674_v18, %s2221_s29 }
 0x836   :  { %v709_v19 = vpop.permute.xlu0 %708 }
 0x837   :  { %1921 = vmatmul.mubr.msk.bf16.vlgmr.msra.gmra.mrb[12].mxu1 %vm90_vm1, %v709_v19 }
 0x838   :  { %1933 = vmatpush3.bf16.msra.mxu1 %v2289_v2  ;;  %1936 = vmatprep.mubr.msk.bf16.mxu1 %vm2219_vm0, %v2218_v1 }
 0x839   :  { %1934 = vmatprep.subr.bf16.mxu1 %v2218_v1 }
 0x83c   :  { %1935 = vmatpush3.bf16.msra.mxu1 %v2304_v6 }
 0x83d   :  { %1948 = vmatprep.subr.bf16.mxu1 %v2218_v1 }
 0x856   :  { %v677_v20 = vpop.permute.xlu0 %676 }
 0x857   :  { %v679_v21 = vadd.f32 %v677_v20, %v2357_v31 }
 0x859   :  { %2078 = vtanh.f32 %v679_v21 }
 0x85a   :  { %2080 = vpow2.f32 %v1781_v24 }
 0x863   :  { %v2079_v22 = vpop.eup %2078 }
 0x864   :  { %683 = vrot.lane.b32.xlu1 %v2079_v22, %s2222_s2  ;;  %v2081_v25 = vpop.eup %2080 }
 0x865   :  { %v665_v26 = vadd.f32 1.0, %v2081_v25 }
 0x867   :  { %2082 = vrcp.f32 %v665_v26 }
 0x871   :  { %v2083_v30 = vpop.eup %2082 }
 0x872   :  { %v681_v33 = vsub.f32 1.0, %v2083_v30  ;;  %v689_v36 = vmul.f32 %v2083_v30, %v687_v34 }
 0x8d6   :  { %v684_v35 = vpop.permute.xlu1 %683 }
 0x8d7   :  { %v686_v38 = vmul.f32 %v684_v35, %v681_v33 }
 0x8d9   :  { %v2471_v39 = vadd.f32 %v689_v36, %v686_v38 }
 0x8db   :  { %v786_v40 = vpack.c.bf16 %v2471_v39, %v2471_v39 }
 0x8dd   :  { %v788_v41 = vrot.slane %v786_v40, 1 }
 0x8df   :  { %1929 = vmatmul.mubr.msk.bf16.vlgmr.msra.gmra.mrb[16].mxu0 %vm90_vm1, %v788_v41 }
 0x8e0   :  { %1941 = vmatpush3.bf16.msra.mxu0 %v2334_v15  ;;  %1944 = vmatprep.mubr.msk.bf16.mxu0 %vm2219_vm0, %v2218_v1 }
 0x8e1   :  { %1942 = vmatprep.subr.bf16.mxu0 %v2218_v1 }
 0x8e4   :  { %1943 = vmatpush3.bf16.msra.mxu0 %v2340_v16 }
 0x8e5   :  { %1956 = vmatprep.subr.bf16.mxu0 %v2218_v1 }
 0x90a   :  { %v747_v42 = vpop.f32.mrb[12].mxu1 }
 0x90b   :  { %v763_v43 = vadd.f32 %v747_v42, %v2343_v17  ;;  %v1922_v44 = vpop.f32.mrb[13].mxu1  ;;  %v754_v48 = vrot.slane %v747_v42, 2 }
 0x90c   :  { %v750_v45 = vpop.f32.mrb[14].mxu1 }
 0x90d   :  { %v765_v46 = vrot.slane %v763_v43, 2  ;;  %v1923_v47 = vpop.f32.mrb[15].mxu1  ;;  %v756_v49 = vadd.f32 %v754_v48, %v2361_v32  ;;  %v868_v43 = vrot.slane %v2471_v39, 2 }
 0x90f   :  { %766 = vrot.lane.b32.xlu0 %v765_v46, %s2221_s29  ;;  %v1783_v50 = vmul.f32 -1.442695, %v756_v49 }
 0x911   :  { %2084 = vpow2.f32 %v1783_v50 }
 0x91b   :  { %v2085_v51 = vpop.eup %2084 }
 0x91c   :  { %v760_v54 = vadd.f32 1.0, %v2085_v51 }
 0x91e   :  { %2086 = vrcp.f32 %v760_v54 }
 0x928   :  { %v2087_v55 = vpop.eup %2086 }
 0x929   :  { %v776_v12 = vsub.f32 1.0, %v2087_v55  ;;  %v784_v18 = vmul.f32 %v2087_v55, %v782_v13 }
 0x981   :  { %v767_v56 = vpop.permute.xlu0 %766 }
 0x982   :  { %v769_v58 = vmul.f32 %v2087_v55, %v767_v56 }
 0x984   :  { %771 = vrot.lane.b32.xlu1 %v769_v58, %s2221_s29 }
 0x9b2   :  { %v826_v59 = vpop.f32.mrb[16].mxu0 }
 0x9b3   :  { %v1930_v60 = vpop.f32.mrb[17].mxu0  ;;  %833 = vrot.lane.b32.xlu1 %v826_v59, %s2222_s2  ;;  %v850_v5 = vadd.f32 %v826_v59, %v2373_v53 }
 0x9b4   :  { %v829_v61 = vpop.f32.mrb[18].mxu0 }
 0x9b5   :  { %v1931_v62 = vpop.f32.mrb[19].mxu0 }
 0x9f6   :  { %v772_v63 = vpop.permute.xlu1 %771 }
 0x9f7   :  { %v774_v0 = vadd.f32 %v772_v63, %v2361_v32 }
 0x9f9   :  { %2088 = vtanh.f32 %v774_v0 }
 0xa03   :  { %v2089_v3 = vpop.eup %2088 }
 0xa04   :  { %778 = vrot.lane.b32.xlu0 %v2089_v3, %s2222_s2 }
 0xa08   :  { %852 = vrot.lane.b32.xlu0 %v850_v5, %s2223_s6 }
 0xa25   :  { %v834_v7 = vpop.permute.xlu1 %833 }
 0xa26   :  { %v836_v8 = vadd.f32 %v834_v7, %v2355_v29  ;;  %v843_v35 = vadd.f32 %v834_v7, %v2357_v31 }
 0xa28   :  { %v1785_v9 = vmul.f32 -1.442695, %v836_v8  ;;  %v1786_v36 = vmul.f32 -1.442695, %v843_v35 }
 0xa2a   :  { %2090 = vpow2.f32 %v1785_v9 }
 0xa34   :  { %v2091_v10 = vpop.eup %2090 }
 0xa35   :  { %v840_v11 = vadd.f32 1.0, %v2091_v10 }
 0xa37   :  { %2092 = vrcp.f32 %v840_v11 }
 0xa41   :  { %v2093_v21 = vpop.eup %2092 }
 0xa76   :  { %v779_v14 = vpop.permute.xlu0 %778 }
 0xa77   :  { %v781_v19 = vmul.f32 %v779_v14, %v776_v12 }
 0xa79   :  { %v2493_v20 = vadd.f32 %v784_v18, %v781_v19 }
 0xa7a   :  { %v853_v22 = vpop.permute.xlu0 %852 }
 0xa7b   :  { %v855_v23 = vmul.f32 %v2093_v21, %v853_v22  ;;  %v886_v24 = vpack.c.bf16 %v2493_v20, %v2493_v20 }
 0xa7d   :  { %857 = vrot.lane.b32.xlu0 %v855_v23, %s2221_s29  ;;  %v888_v25 = vrot.slane %v886_v24, 3 }
 0xa7f   :  { %889 = vrot.lane.b32.xlu1 %v888_v25, %s2222_s2 }
 0xaef   :  { %v858_v26 = vpop.permute.xlu0 %857 }
 0xaf0   :  { %v860_v30 = vadd.f32 %v858_v26, %v2357_v31  ;;  %v959_v26 = vrot.slane %v2493_v20, 6 }
 0xaf1   :  { %v890_v33 = vpop.permute.xlu1 %889 }
 0xaf2   :  { %2094 = vtanh.f32 %v860_v30  ;;  %1937 = vmatmul.mubr.msk.bf16.vlgmr.msra.gmra.mrb[16].mxu1 %vm90_vm1, %v890_v33 }
 0xaf3   :  { %1949 = vmatpush3.bf16.msra.mxu1 %v2289_v2  ;;  %1952 = vmatprep.mubr.msk.bf16.mxu1 %vm2219_vm0, %v2218_v1  ;;  %2096 = vpow2.f32 %v1786_v36 }
 0xaf4   :  { %1950 = vmatprep.subr.bf16.mxu1 %v2218_v1 }
 0xaf7   :  { %1951 = vmatpush3.bf16.msra.mxu1 %v2304_v6 }
 0xaf8   :  { %1964 = vmatprep.subr.bf16.mxu1 %v2218_v1 }
 0xafc   :  { %v2095_v34 = vpop.eup %2094 }
 0xafd   :  { %864 = vrot.lane.b32.xlu1 %v2095_v34, %s2222_s2  ;;  %v2097_v38 = vpop.eup %2096 }
 0xafe   :  { %v847_v40 = vadd.f32 1.0, %v2097_v38 }
 0xb00   :  { %2098 = vrcp.f32 %v847_v40 }
 0xb0a   :  { %v2099_v41 = vpop.eup %2098 }
 0xb0b   :  { %v862_v42 = vsub.f32 1.0, %v2099_v41  ;;  %v870_v45 = vmul.f32 %v2099_v41, %v868_v43 }
 0xb6f   :  { %v865_v44 = vpop.permute.xlu1 %864 }
 0xb70   :  { %v867_v46 = vmul.f32 %v865_v44, %v862_v42 }
 0xb72   :  { %v2510_v47 = vadd.f32 %v870_v45, %v867_v46 }
 0xb74   :  { %v963_v48 = vpack.c.bf16 %v2510_v47, %v2510_v47 }
 0xb76   :  { %1945 = vmatmul.mubr.msk.bf16.vlgmr.msra.gmra.mrb[20].mxu0 %vm90_vm1, %v963_v48 }
 0xb77   :  { %1957 = vmatpush3.bf16.msra.mxu0 %v2334_v15  ;;  %1960 = vmatprep.mubr.msk.bf16.mxu0 %vm2219_vm0, %v2218_v1 }
 0xb78   :  { %1958 = vmatprep.subr.bf16.mxu0 %v2218_v1 }
 0xb7b   :  { %1959 = vmatpush3.bf16.msra.mxu0 %v2340_v16 }
 0xb7c   :  { %1972 = vmatprep.subr.bf16.mxu0 %v2218_v1 }
 0xbc5   :  { %v928_v31 = vpop.f32.mrb[16].mxu1 }
 0xbc6   :  { %v941_v49 = vadd.f32 %v928_v31, %v2343_v17  ;;  %v1938_v50 = vpop.f32.mrb[17].mxu1  ;;  %v934_v55 = vadd.f32 %v928_v31, %v2355_v29 }
 0xbc7   :  { %v931_v51 = vpop.f32.mrb[18].mxu1 }
 0xbc8   :  { %943 = vrot.lane.b32.xlu0 %v941_v49, %s2221_s29  ;;  %v1939_v54 = vpop.f32.mrb[19].mxu1  ;;  %v1788_v56 = vmul.f32 -1.442695, %v934_v55  ;;  %v1045_v49 = vrot.slane %v2510_v47, 2 }
 0xbca   :  { %2100 = vpow2.f32 %v1788_v56 }
 0xbd4   :  { %v2101_v58 = vpop.eup %2100 }
 0xbd5   :  { %v938_v59 = vadd.f32 1.0, %v2101_v58 }
 0xbd7   :  { %2102 = vrcp.f32 %v938_v59 }
 0xbe1   :  { %v2103_v60 = vpop.eup %2102 }
 0xbe2   :  { %v953_v25 = vsub.f32 1.0, %v2103_v60  ;;  %v961_v33 = vmul.f32 %v2103_v60, %v959_v26 }
 0xc3a   :  { %v944_v61 = vpop.permute.xlu0 %943 }
 0xc3b   :  { %v946_v62 = vmul.f32 %v2103_v60, %v944_v61 }
 0xc3d   :  { %948 = vrot.lane.b32.xlu1 %v946_v62, %s2221_s29 }
 0xc49   :  { %v1001_v63 = vpop.f32.mrb[20].mxu0 }
 0xc4a   :  { %v1008_v0 = vrot.slane %v1001_v63, 2  ;;  %v1026_v3 = vadd.f32 %v1001_v63, %v2373_v53  ;;  %v1946_v5 = vpop.f32.mrb[21].mxu0 }
 0xc4b   :  { %v1004_v7 = vpop.f32.mrb[22].mxu0 }
 0xc4c   :  { %1009 = vrot.lane.b32.xlu0 %v1008_v0, %s2222_s2  ;;  %v1947_v8 = vpop.f32.mrb[23].mxu0  ;;  %v1028_v9 = vrot.slane %v1026_v3, 2 }
 0xc50   :  { %1029 = vrot.lane.b32.xlu0 %v1028_v9, %s2223_s6 }
 0xcaf   :  { %v949_v10 = vpop.permute.xlu1 %948 }
 0xcb0   :  { %v951_v11 = vadd.f32 %v949_v10, %v2355_v29 }
 0xcb2   :  { %2104 = vtanh.f32 %v951_v11 }
 0xcbc   :  { %v2105_v12 = vpop.eup %2104 }
 0xcbd   :  { %955 = vrot.lane.b32.xlu1 %v2105_v12, %s2222_s2 }
 0xcbe   :  { %v1010_v13 = vpop.permute.xlu0 %1009 }
 0xcbf   :  { %v1012_v14 = vadd.f32 %v1010_v13, %v2361_v32  ;;  %v1019_v42 = vadd.f32 %v1010_v13, %v2352_v27 }
 0xcc1   :  { %v1790_v18 = vmul.f32 -1.442695, %v1012_v14  ;;  %v1791_v44 = vmul.f32 -1.442695, %v1019_v42 }
 0xcc2   :  { %v1030_v23 = vpop.permute.xlu0 %1029 }
 0xcc3   :  { %2106 = vpow2.f32 %v1790_v18 }
 0xccd   :  { %v2107_v19 = vpop.eup %2106 }
 0xcce   :  { %v1016_v21 = vadd.f32 1.0, %v2107_v19 }
 0xcd0   :  { %2108 = vrcp.f32 %v1016_v21 }
 0xcda   :  { %v2109_v22 = vpop.eup %2108 }
 0xcdb   :  { %v1032_v24 = vmul.f32 %v2109_v22, %v1030_v23 }
 0xcdd   :  { %1034 = vrot.lane.b32.xlu0 %v1032_v24, %s2221_s29 }
 0xd2f   :  { %v956_v30 = vpop.permute.xlu1 %955 }
 0xd30   :  { %v958_v34 = vmul.f32 %v956_v30, %v953_v25 }
 0xd32   :  { %v2533_v35 = vadd.f32 %v961_v33, %v958_v34 }
 0xd34   :  { %v1059_v36 = vpack.c.bf16 %v2533_v35, %v2533_v35  ;;  %v1135_v42 = vrot.slane %v2533_v35, 6 }
 0xd36   :  { %1061 = vrot.lane.b32.xlu1 %v1059_v36, %s2222_s2 }
 0xd4f   :  { %v1035_v38 = vpop.permute.xlu0 %1034 }
 0xd50   :  { %v1037_v40 = vadd.f32 %v1035_v38, %v2352_v27 }
 0xd52   :  { %2110 = vtanh.f32 %v1037_v40 }
 0xd53   :  { %2112 = vpow2.f32 %v1791_v44 }
 0xd5c   :  { %v2111_v41 = vpop.eup %2110 }
 0xd5d   :  { %1041 = vrot.lane.b32.xlu1 %v2111_v41, %s2222_s2  ;;  %v2113_v45 = vpop.eup %2112 }
 0xd5e   :  { %v1023_v46 = vadd.f32 1.0, %v2113_v45 }
 0xd60   :  { %2114 = vrcp.f32 %v1023_v46 }
 0xd6a   :  { %v2115_v48 = vpop.eup %2114 }
 0xd6b   :  { %v1039_v31 = vsub.f32 1.0, %v2115_v48 }
 0xda8   :  { %v1062_v43 = vpop.permute.xlu1 %1061 }
 0xda9   :  { %1953 = vmatmul.mubr.msk.bf16.vlgmr.msra.gmra.mrb[20].mxu1 %vm90_vm1, %v1062_v43 }
 0xdaa   :  { %1965 = vmatpush3.bf16.msra.mxu1 %v2289_v2  ;;  %1968 = vmatprep.mubr.msk.bf16.mxu1 %vm2219_vm0, %v2218_v1  ;;  %v1047_v2 = vmul.f32 %v2115_v48, %v1045_v49 }
 0xdab   :  { %1966 = vmatprep.subr.bf16.mxu1 %v2218_v1 }
 0xdae   :  { %1967 = vmatpush3.bf16.msra.mxu1 %v2304_v6 }
 0xdaf   :  { %1980 = vmatprep.subr.bf16.mxu1 %v2218_v1 }
 0xdcf   :  { %v1042_v50 = vpop.permute.xlu1 %1041 }
 0xdd0   :  { %v1044_v51 = vmul.f32 %v1042_v50, %v1039_v31 }
 0xdd2   :  { %v2549_v54 = vadd.f32 %v1047_v2, %v1044_v51 }
 0xdd4   :  { %v1139_v55 = vpack.c.bf16 %v2549_v54, %v2549_v54 }
 0xdd6   :  { %v1141_v56 = vrot.slane %v1139_v55, 3 }
 0xdd8   :  { %1961 = vmatmul.mubr.msk.bf16.vlgmr.msra.gmra.mrb[24].mxu0 %vm90_vm1, %v1141_v56 }
 0xdd9   :  { %1973 = vmatpush3.bf16.msra.mxu0 %v2334_v15  ;;  %1976 = vmatprep.mubr.msk.bf16.mxu0 %vm2219_vm0, %v2218_v1 }
 0xdda   :  { %1974 = vmatprep.subr.bf16.mxu0 %v2218_v1 }
 0xddd   :  { %1975 = vmatpush3.bf16.msra.mxu0 %v2340_v16 }
 0xdde   :  { %1988 = vmatprep.subr.bf16.mxu0 %v2218_v1 }
 0xe7c   :  { %v1100_v6 = vpop.f32.mrb[20].mxu1 }
 0xe7d   :  { %v1116_v58 = vadd.f32 %v1100_v6, %v2343_v17  ;;  %v1954_v59 = vpop.f32.mrb[21].mxu1  ;;  %v1107_v7 = vrot.slane %v1100_v6, 6 }
 0xe7e   :  { %v1103_v60 = vpop.f32.mrb[22].mxu1 }
 0xe7f   :  { %v1118_v61 = vrot.slane %v1116_v58, 6  ;;  %v1955_v62 = vpop.f32.mrb[23].mxu1  ;;  %v1109_v16 = vadd.f32 %v1107_v7, %v2355_v29  ;;  %v1223_v58 = vrot.slane %v2549_v54, 2  ;;  %v2168_v7 = vld [vmem:[%s2743_s4] sm:$0xff]  }
 0xe81   :  { %1119 = vrot.lane.b32.xlu0 %v1118_v61, %s2221_s29  ;;  %v1793_v8 = vmul.f32 -1.442695, %v1109_v16  ;;  %v2169_v16 = vld [vmem:[%s2743_s4 + $0x8] sm:$0xff]  }
 0xe83   :  { %2116 = vpow2.f32 %v1793_v8 }
 0xe8d   :  { %v2117_v9 = vpop.eup %2116 }
 0xe8e   :  { %v1113_v10 = vadd.f32 1.0, %v2117_v9 }
 0xe90   :  { %2118 = vrcp.f32 %v1113_v10 }
 0xe9a   :  { %v2119_v11 = vpop.eup %2118 }
 0xe9b   :  { %v1129_v41 = vsub.f32 1.0, %v2119_v11  ;;  %v1137_v44 = vmul.f32 %v2119_v11, %v1135_v42 }
 0xeab   :  { %v1179_v63 = vpop.f32.mrb[24].mxu0 }
 0xeac   :  { %v1186_v15 = vrot.slane %v1179_v63, 4  ;;  %v1962_v0 = vpop.f32.mrb[25].mxu0  ;;  %v1204_v13 = vadd.f32 %v1179_v63, %v2373_v53 }
 0xead   :  { %v1182_v3 = vpop.f32.mrb[26].mxu0 }
 0xeae   :  { %1187 = vrot.lane.b32.xlu0 %v1186_v15, %s2222_s2  ;;  %v1963_v5 = vpop.f32.mrb[27].mxu0  ;;  %v1206_v18 = vrot.slane %v1204_v13, 4  ;;  %v2166_v15 = vld [vmem:[%s2742_s3] sm:$0xff]  }
 0xeaf   :  { %v2167_v5 = vld [vmem:[%s2742_s3 + $0x8] sm:$0xff]  }
 0xef3   :  { %v1120_v12 = vpop.permute.xlu0 %1119 }
 0xef4   :  { %v1122_v14 = vmul.f32 %v2119_v11, %v1120_v12 }
 0xef6   :  { %1124 = vrot.lane.b32.xlu1 %v1122_v14, %s2221_s29 }
 0xefa   :  { %1207 = vrot.lane.b32.xlu1 %v1206_v18, %s2223_s6 }
 0xf20   :  { %v1188_v19 = vpop.permute.xlu0 %1187 }
 0xf21   :  { %v1190_v21 = vadd.f32 %v1188_v19, %v2361_v32  ;;  %v1197_v50 = vadd.f32 %v1188_v19, %v2352_v27 }
 0xf23   :  { %v1795_v22 = vmul.f32 -1.442695, %v1190_v21  ;;  %v1796_v2 = vmul.f32 -1.442695, %v1197_v50 }
 0xf25   :  { %2120 = vpow2.f32 %v1795_v22 }
 0xf2f   :  { %v2121_v23 = vpop.eup %2120 }
 0xf30   :  { %v1194_v24 = vadd.f32 1.0, %v2121_v23 }
 0xf32   :  { %2122 = vrcp.f32 %v1194_v24 }
 0xf3c   :  { %v2123_v30 = vpop.eup %2122 }
 0xf68   :  { %v1125_v25 = vpop.permute.xlu1 %1124 }
 0xf69   :  { %v1127_v26 = vadd.f32 %v1125_v25, %v2355_v29 }
 0xf6b   :  { %2124 = vtanh.f32 %v1127_v26 }
 0xf6c   :  { %v1208_v33 = vpop.permute.xlu1 %1207 }
 0xf6d   :  { %v1210_v34 = vmul.f32 %v2123_v30, %v1208_v33 }
 0xf6f   :  { %1212 = vrot.lane.b32.xlu1 %v1210_v34, %s2221_s29 }
 0xf75   :  { %v2125_v36 = vpop.eup %2124 }
 0xf76   :  { %1131 = vrot.lane.b32.xlu0 %v2125_v36, %s2222_s2 }
 0xfe1   :  { %v1213_v38 = vpop.permute.xlu1 %1212 }
 0xfe2   :  { %v1215_v40 = vadd.f32 %v1213_v38, %v2352_v27 }
 0xfe4   :  { %2126 = vtanh.f32 %v1215_v40 }
 0xfe5   :  { %2128 = vpow2.f32 %v1796_v2 }
 0xfe8   :  { %v1132_v43 = vpop.permute.xlu0 %1131 }
 0xfe9   :  { %v1134_v45 = vmul.f32 %v1132_v43, %v1129_v41 }
 0xfeb   :  { %v2573_v46 = vadd.f32 %v1137_v44, %v1134_v45 }
 0xfed   :  { %v1237_v48 = vpack.c.bf16 %v2573_v46, %v2573_v46 }
 0xfee   :  { %v2127_v31 = vpop.eup %2126 }
 0xfef   :  { %1219 = vrot.lane.b32.xlu1 %v2127_v31, %s2222_s2  ;;  %v1239_v49 = vrot.slane %v1237_v48, 1  ;;  %v2129_v51 = vpop.eup %2128 }
 0xff0   :  { %v1201_v55 = vadd.f32 1.0, %v2129_v51 }
 0xff1   :  { %1240 = vrot.lane.b32.xlu0 %v1239_v49, %s2222_s2 }
 0xff2   :  { %2130 = vrcp.f32 %v1201_v55 }
 0xffc   :  { %v2131_v56 = vpop.eup %2130 }
 0xffd   :  { %v1217_v6 = vsub.f32 1.0, %v2131_v56  ;;  %v1225_v60 = vmul.f32 %v2131_v56, %v1223_v58  ;;  %v1314_v58 = vrot.slane %v2573_v46, 6 }
0x1061   :  { %v1220_v59 = vpop.permute.xlu1 %1219 }
0x1062   :  { %v1222_v61 = vmul.f32 %v1220_v59, %v1217_v6 }
0x1063   :  { %v1241_v62 = vpop.permute.xlu0 %1240 }
0x1064   :  { %v2581_v63 = vadd.f32 %v1225_v60, %v1222_v61  ;;  %1969 = vmatmul.mubr.msk.bf16.vlgmr.msra.gmra.mrb[24].mxu1 %vm90_vm1, %v1241_v62 }
0x1065   :  { %1981 = vmatpush3.bf16.msra.mxu1 %v2166_v15  ;;  %1984 = vmatprep.mubr.msk.bf16.mxu1 %vm2219_vm0, %v2218_v1 }
0x1066   :  { %v1318_v0 = vpack.c.bf16 %v2581_v63, %v2581_v63  ;;  %1982 = vmatprep.subr.bf16.mxu1 %v2218_v1 }
0x1068   :  { %v1320_v3 = vrot.slane %v1318_v0, 2 }
0x1069   :  { %1983 = vmatpush3.bf16.msra.mxu1 %v2167_v5 }
0x106a   :  { %1977 = vmatmul.mubr.msk.bf16.vlgmr.msra.gmra.mrb[28].mxu0 %vm90_vm1, %v1320_v3  ;;  %1996 = vmatprep.subr.bf16.mxu1 %v2218_v1 }
0x106b   :  { %1989 = vmatpush3.bf16.msra.mxu0 %v2168_v7  ;;  %1992 = vmatprep.mubr.msk.bf16.mxu0 %vm2219_vm0, %v2218_v1 }
0x106c   :  { %1990 = vmatprep.subr.bf16.mxu0 %v2218_v1 }
0x106f   :  { %1991 = vmatpush3.bf16.msra.mxu0 %v2169_v16 }
0x1070   :  { %2004 = vmatprep.subr.bf16.mxu0 %v2218_v1 }
0x1137   :  { %v1279_v8 = vpop.f32.mrb[24].mxu1 }
0x1138   :  { %v1295_v9 = vadd.f32 %v1279_v8, %v2343_v17  ;;  %v1970_v10 = vpop.f32.mrb[25].mxu1  ;;  %v1286_v23 = vrot.slane %v1279_v8, 4 }
0x1139   :  { %v1282_v11 = vpop.f32.mrb[26].mxu1 }
0x113a   :  { %v1297_v12 = vrot.slane %v1295_v9, 4  ;;  %v1971_v13 = vpop.f32.mrb[27].mxu1  ;;  %v1288_v24 = vadd.f32 %v1286_v23, %v2355_v29  ;;  %v1402_v11 = vrot.slane %v2581_v63, 2 }
0x113c   :  { %1298 = vrot.lane.b32.xlu0 %v1297_v12, %s2221_s29  ;;  %v1798_v25 = vmul.f32 -1.442695, %v1288_v24 }
0x113d   :  { %v1358_v14 = vpop.f32.mrb[28].mxu0 }
0x113e   :  { %v1365_v18 = vrot.slane %v1358_v14, 6  ;;  %v1978_v19 = vpop.f32.mrb[29].mxu0  ;;  %2132 = vpow2.f32 %v1798_v25  ;;  %v1383_v36 = vadd.f32 %v1358_v14, %v2373_v53 }
0x113f   :  { %v1361_v21 = vpop.f32.mrb[30].mxu0 }
0x1140   :  { %1366 = vrot.lane.b32.xlu0 %v1365_v18, %s2222_s2  ;;  %v1979_v22 = vpop.f32.mrb[31].mxu0  ;;  %v1385_v40 = vrot.slane %v1383_v36, 6 }
0x1148   :  { %v2133_v26 = vpop.eup %2132 }
0x1149   :  { %v1292_v30 = vadd.f32 1.0, %v2133_v26 }
0x114b   :  { %2134 = vrcp.f32 %v1292_v30 }
0x1155   :  { %v2135_v33 = vpop.eup %2134 }
0x1156   :  { %v1308_v6 = vsub.f32 1.0, %v2135_v33  ;;  %v1316_v60 = vmul.f32 %v2135_v33, %v1314_v58 }
0x11ae   :  { %v1299_v34 = vpop.permute.xlu0 %1298 }
0x11af   :  { %v1301_v38 = vmul.f32 %v2135_v33, %v1299_v34 }
0x11b1   :  { %1303 = vrot.lane.b32.xlu1 %v1301_v38, %s2221_s29 }
0x11b2   :  { %v1367_v41 = vpop.permute.xlu0 %1366 }
0x11b3   :  { %v1369_v42 = vadd.f32 %v1367_v41, %v2361_v32  ;;  %v1376_v5 = vadd.f32 %v1367_v41, %v2352_v27 }
0x11b5   :  { %1386 = vrot.lane.b32.xlu1 %v1385_v40, %s2223_s6  ;;  %v1800_v43 = vmul.f32 -1.442695, %v1369_v42  ;;  %v1801_v7 = vmul.f32 -1.442695, %v1376_v5  ;;  %v2034_v5 = vld [vmem:[%s2746_s7] sm:$0xff]  }
0x11b7   :  { %2136 = vpow2.f32 %v1800_v43 }
0x11c1   :  { %v2137_v44 = vpop.eup %2136 }
0x11c2   :  { %v1373_v45 = vadd.f32 1.0, %v2137_v44 }
0x11c4   :  { %2138 = vrcp.f32 %v1373_v45 }
0x11ce   :  { %v2139_v49 = vpop.eup %2138 }
0x1223   :  { %v1304_v48 = vpop.permute.xlu1 %1303 }
0x1224   :  { %v1306_v31 = vadd.f32 %v1304_v48, %v2355_v29 }
0x1226   :  { %2140 = vtanh.f32 %v1306_v31 }
0x1227   :  { %v1387_v50 = vpop.permute.xlu1 %1386 }
0x1228   :  { %v1389_v2 = vmul.f32 %v2139_v49, %v1387_v50 }
0x122a   :  { %1391 = vrot.lane.b32.xlu1 %v1389_v2, %s2221_s29 }
0x1230   :  { %v2141_v51 = vpop.eup %2140 }
0x1231   :  { %1310 = vrot.lane.b32.xlu0 %v2141_v51, %s2222_s2 }
0x129c   :  { %v1392_v55 = vpop.permute.xlu1 %1391 }
0x129d   :  { %v1394_v56 = vadd.f32 %v1392_v55, %v2352_v27 }
0x129f   :  { %2142 = vtanh.f32 %v1394_v56 }
0x12a0   :  { %2144 = vpow2.f32 %v1801_v7 }
0x12a3   :  { %v1311_v59 = vpop.permute.xlu0 %1310 }
0x12a4   :  { %v1313_v61 = vmul.f32 %v1311_v59, %v1308_v6 }
0x12a6   :  { %v2620_v62 = vadd.f32 %v1316_v60, %v1313_v61 }
0x12a8   :  { %v1416_v15 = vpack.c.bf16 %v2620_v62, %v2620_v62 }
0x12a9   :  { %v2143_v0 = vpop.eup %2142 }
0x12aa   :  { %1398 = vrot.lane.b32.xlu1 %v2143_v0, %s2222_s2  ;;  %v1418_v3 = vrot.slane %v1416_v15, 2  ;;  %v2145_v16 = vpop.eup %2144 }
0x12ab   :  { %v1380_v8 = vadd.f32 1.0, %v2145_v16 }
0x12ac   :  { %1419 = vrot.lane.b32.xlu0 %v1418_v3, %s2222_s2  ;;  %v2033_v3 = vld [vmem:[%s2746_s7 + $0x18] sm:$0xff]  }
0x12ad   :  { %2146 = vrcp.f32 %v1380_v8 }
0x12b7   :  { %v2147_v9 = vpop.eup %2146 }
0x12b8   :  { %v1396_v10 = vsub.f32 1.0, %v2147_v9  ;;  %v1404_v13 = vmul.f32 %v2147_v9, %v1402_v11 }
0x131c   :  { %v1399_v12 = vpop.permute.xlu1 %1398 }
0x131d   :  { %v1401_v14 = vmul.f32 %v1399_v12, %v1396_v10 }
0x131e   :  { %v1420_v18 = vpop.permute.xlu0 %1419 }
0x131f   :  { %v2628_v19 = vadd.f32 %v1404_v13, %v1401_v14  ;;  %1985 = vmatmul.mubr.msk.bf16.vlgmr.msra.gmra.mrb[28].mxu1 %vm90_vm1, %v1420_v18 }
0x1320   :  { %2000 = vmatprep.mubr.msk.bf16.mxu1 %vm2219_vm0, %v2218_v1 }
0x1321   :  { %v1497_v21 = vpack.c.bf16 %v2628_v19, %v2628_v19  ;;  %v1579_v12 = vrot.slane %v2628_v19, 2 }
0x1323   :  { %v1499_v22 = vrot.slane %v1497_v21, 1 }
0x1325   :  { %1993 = vmatmul.mubr.msk.bf16.vlgmr.msra.gmra.mrb[32].mxu0 %vm90_vm1, %v1499_v22 }
0x1326   :  { %2008 = vmatprep.mubr.msk.bf16.mxu0 %vm2219_vm0, %v2218_v1  ;;  %2005 = vmatpush3.bf16.msra.mxu0 %v2034_v5 }
0x1327   :  { %2006 = vmatprep.subr.bf16.mxu0 %v2218_v1 }
0x13f2   :  { %v1458_v23 = vpop.f32.mrb[28].mxu1 }
0x13f3   :  { %v1474_v24 = vadd.f32 %v1458_v23, %v2343_v17  ;;  %v1986_v25 = vpop.f32.mrb[29].mxu1  ;;  %v1465_v42 = vrot.slane %v1458_v23, 2 }
0x13f4   :  { %v1461_v26 = vpop.f32.mrb[30].mxu1 }
0x13f5   :  { %v1476_v30 = vrot.slane %v1474_v24, 2  ;;  %v1987_v33 = vpop.f32.mrb[31].mxu1  ;;  %v1467_v43 = vadd.f32 %v1465_v42, %v2355_v29 }
0x13f7   :  { %1477 = vrot.lane.b32.xlu0 %v1476_v30, %s2221_s29  ;;  %v1803_v17 = vmul.f32 -1.442695, %v1467_v43 }
0x13f8   :  { %v1537_v34 = vpop.f32.mrb[32].mxu0 }
0x13f9   :  { %1544 = vrot.lane.b32.xlu1 %v1537_v34, %s2222_s2  ;;  %v1994_v36 = vpop.f32.mrb[33].mxu0  ;;  %v1561_v40 = vadd.f32 %v1537_v34, %v2373_v53  ;;  %2148 = vpow2.f32 %v1803_v17 }
0x13fa   :  { %v1540_v38 = vpop.f32.mrb[34].mxu0 }
0x13fb   :  { %v1995_v41 = vpop.f32.mrb[35].mxu0 }
0x13fd   :  { %1563 = vrot.lane.b32.xlu1 %v1561_v40, %s2223_s6 }
0x1403   :  { %v2149_v44 = vpop.eup %2148 }
0x1404   :  { %v1471_v45 = vadd.f32 1.0, %v2149_v44 }
0x1406   :  { %2150 = vrcp.f32 %v1471_v45 }
0x1410   :  { %v2151_v48 = vpop.eup %2150 }
0x1469   :  { %v1478_v31 = vpop.permute.xlu0 %1477 }
0x146a   :  { %v1480_v49 = vmul.f32 %v2151_v48, %v1478_v31 }
0x146b   :  { %v1545_v50 = vpop.permute.xlu1 %1544 }
0x146c   :  { %v1547_v2 = vadd.f32 %v1545_v50, %v2361_v32  ;;  %1482 = vrot.lane.b32.xlu0 %v1480_v49, %s2221_s29  ;;  %v2032_v32 = vld [vmem:[%s2746_s7 + $0x10] sm:$0xff]  }
0x146d   :  { %1997 = vmatpush3.bf16.msra.mxu1 %v2032_v32 }
0x146e   :  { %v1805_v53 = vmul.f32 -1.442695, %v1547_v2  ;;  %1998 = vmatprep.subr.bf16.mxu1 %v2218_v1  ;;  %v1493_v1 = vrot.slane %v2620_v62, 6 }
0x146f   :  { %v1564_v6 = vpop.permute.xlu1 %1563 }
0x1470   :  { %2152 = vpow2.f32 %v1805_v53 }
0x1471   :  { %1999 = vmatpush3.bf16.msra.mxu1 %v2033_v3 }
0x147a   :  { %v2153_v51 = vpop.eup %2152 }
0x147b   :  { %v1551_v55 = vadd.f32 1.0, %v2153_v51 }
0x147d   :  { %2154 = vrcp.f32 %v1551_v55 }
0x1487   :  { %v2155_v56 = vpop.eup %2154 }
0x1488   :  { %v1566_v58 = vmul.f32 %v2155_v56, %v1564_v6 }
0x148a   :  { %1568 = vrot.lane.b32.xlu0 %v1566_v58, %s2221_s29 }
0x14de   :  { %v1483_v59 = vpop.permute.xlu0 %1482 }
0x14df   :  { %v1485_v60 = vadd.f32 %v1483_v59, %v2355_v29 }
0x14e1   :  { %2156 = vtanh.f32 %v1485_v60 }
0x14eb   :  { %v2157_v61 = vpop.eup %2156 }
0x14ec   :  { %1489 = vrot.lane.b32.xlu1 %v2157_v61, %s2222_s2 }
0x14fc   :  { %v1569_v15 = vpop.permute.xlu0 %1568 }
0x14fd   :  { %v1571_v0 = vadd.f32 %v1569_v15, %v2352_v27 }
0x14ff   :  { %2158 = vtanh.f32 %v1571_v0 }
0x1509   :  { %v2159_v29 = vpop.eup %2158 }
0x150a   :  { %1575 = vrot.lane.b32.xlu0 %v2159_v29, %s2222_s2 }
0x150e   :  { %328 = vrot.lane.b32.xlu0 %v2371_v52, %s2222_s2  ;;  %v1554_v52 = vadd.f32 %v1545_v50, %v2352_v27 }
0x1512   :  { %509 = vrot.lane.b32.xlu0 %v2412_v57, %s2222_s2  ;;  %v2035_v57 = vld [vmem:[%s2746_s7 + $0x8] sm:$0xff]   ;;  %s2224_s7 = smov [#allocation2]  }
0x1513   :  { %2007 = vmatpush3.bf16.msra.mxu0 %v2035_v57  ;;  %s1732_s29 = sshll.u32 %s2224_s7, 4  ;;  %s1733_s29 = int_to_ptr.vmem [resolvable:$true] %s1732_s29 }
0x1514   :  { %s2170_s0 = scalar_lea.vmem %s1733_s29, 256  ;;  %p2175_p1 = scmp.lt.s32.totalorder %s1733_s29, %s1733_s29 }
0x1515   :  { %p2171_p0 = scmp.ne.s32.totalorder %s1733_s29, %s2170_s0  ;;  %p2176_p2 = scmp.lt.s32.totalorder %s2170_s0, %s2170_s0 }
0x1516   :  { %692 = vrot.lane.b32.xlu0 %v2453_v4, %s2222_s2  ;;  %v1806_v4 = vmul.f32 -1.442695, %v1554_v52 }
0x1517   :  { %p2177_p3 = por %p2176_p2, %p2175_p1 }
0x1518   :  { %2160 = vpow2.f32 %v1806_v4 }
0x1519   :  { %p2178_p4 = pnand %p2177_p3, %p2171_p0 }
0x151a   :  { %873 = vrot.lane.b32.xlu0 %v2493_v20, %s2222_s2  ;;  %v1487_v20 = vsub.f32 1.0, %v2151_v48 }
0x151e   :  { %1050 = vrot.lane.b32.xlu0 %v2533_v35, %s2222_s2  ;;  %v1495_v35 = vmul.f32 %v2151_v48, %v1493_v1 }
0x1522   :  { %1228 = vrot.lane.b32.xlu0 %v2573_v46, %s2222_s2  ;;  %v2161_v10 = vpop.eup %2160 }
0x1523   :  { %v1558_v27 = vadd.f32 1.0, %v2161_v10 }
0x1525   :  { %2162 = vrcp.f32 %v1558_v27 }
0x1526   :  { %1407 = vrot.lane.b32.xlu0 %v2620_v62, %s2222_s2 }
0x152f   :  { %v2163_v62 = vpop.eup %2162 }
0x1530   :  { %v1573_v11 = vsub.f32 1.0, %v2163_v62  ;;  %v1581_v14 = vmul.f32 %v2163_v62, %v1579_v12 }
0x155e   :  { %v1490_v7 = vpop.permute.xlu1 %1489 }
0x155f   :  { %v1492_v16 = vmul.f32 %v1490_v7, %v1487_v20 }
0x1561   :  { %v1496_v8 = vadd.f32 %v1495_v35, %v1492_v16 }
0x1563   :  { %1584 = vrot.lane.b32.xlu0 %v1496_v8, %s2222_s2  ;;  %v1593_v46 = vpack.c.bf16 %v1496_v8, %v1496_v8 }
0x1565   :  { %v1659_v9 = vrot.slane %v1593_v46, 3 }
0x1567   :  { %1660 = vrot.lane.b32.xlu1 %v1659_v9, %s2222_s2 }
0x156b   :  { %334 = vrot.lane.b32.xlu1 %v2395_v28, %s2223_s6 }
0x156f   :  { %516 = vrot.lane.b32.xlu1 %v2434_v37, %s2223_s6 }
0x1573   :  { %699 = vrot.lane.b32.xlu1 %v2471_v39, %s2223_s6 }
0x1577   :  { %880 = vrot.lane.b32.xlu1 %v2510_v47, %s2223_s6 }
0x157b   :  { %1055 = vrot.lane.b32.xlu1 %v2549_v54, %s2223_s6 }
0x157c   :  { %v1576_v13 = vpop.permute.xlu0 %1575 }
0x157d   :  { %v1578_v28 = vmul.f32 %v1576_v13, %v1573_v11 }
0x157f   :  { %v1582_v18 = vadd.f32 %v1581_v14, %v1578_v28  ;;  %1233 = vrot.lane.b32.xlu1 %v2581_v63, %s2223_s6 }
0x1580   :  { %v329_v37 = vpop.permute.xlu0 %328 }
0x1581   :  { %v1598_v39 = vpack.c.bf16 %v1582_v18, %v1582_v18  ;;  %332 = vst.msk [vmem:[#allocation2] sm:$0x3] %vm331_vm2, %v329_v37 }
0x1583   :  { %2001 = vmatmul.mubr.msk.bf16.vlgmr.msra.gmra.mrb[32].mxu1 %vm90_vm1, %v1598_v39  ;;  %1412 = vrot.lane.b32.xlu1 %v2628_v19, %s2223_s6 }
0x1584   :  { %v510_v47 = vpop.permute.xlu0 %509 }
0x1585   :  { %514 = vst.msk [vmem:[#allocation2] sm:$0xc] %vm513_vm3, %v510_v47 }
0x1587   :  { %1589 = vrot.lane.b32.xlu1 %v1582_v18, %s2223_s6 }
0x1588   :  { %v693_v54 = vpop.permute.xlu0 %692 }
0x1589   :  { %697 = vst.msk [vmem:[#allocation2] sm:$0x30] %vm696_vm4, %v693_v54 }
0x158c   :  { %v874_v63 = vpop.permute.xlu0 %873 }
0x158d   :  { %878 = vst.msk [vmem:[#allocation2] sm:$0xc0] %vm877_vm5, %v874_v63 }
0x1590   :  { %v1051_v21 = vpop.permute.xlu0 %1050 }
0x1594   :  { %v1229_v22 = vpop.permute.xlu0 %1228 }
0x1598   :  { %v1408_v24 = vpop.permute.xlu0 %1407 }
0x15d5   :  { %v1585_v25 = vpop.permute.xlu0 %1584 }
0x15d9   :  { %v1661_v23 = vpop.permute.xlu1 %1660 }
0x15da   :  { %2009 = vmatmul.mubr.msk.bf16.vlgmr.msra.gmra.mrb[36].mxu0 %vm90_vm1, %v1661_v23 }
0x15dd   :  { %v335_v19 = vpop.permute.xlu1 %334 }
0x15de   :  { %339 = vst.msk [vmem:[#allocation2 + $0x8] sm:$0xc0] %vm338_vm6, %v335_v19 }
0x15df   :  { %1587 = vst.msk [vmem:[#allocation2 + $0x8] sm:$0xc0] %vm877_vm5, %v1585_v25 }
0x15e1   :  { %v517_v26 = vpop.permute.xlu1 %516 }
0x15e2   :  { %521 = vst.msk [vmem:[#allocation2 + $0x8] sm:$0x30] %vm520_vm7, %v517_v26 }
0x15e3   :  { %1410 = vst.msk [vmem:[#allocation2 + $0x8] sm:$0x30] %vm696_vm4, %v1408_v24 }
0x15e5   :  { %v700_v30 = vpop.permute.xlu1 %699 }
0x15e6   :  { %704 = vst.msk [vmem:[#allocation2 + $0x8] sm:$0xc] %vm703_vm8, %v700_v30 }
0x15e7   :  { %1231 = vst.msk [vmem:[#allocation2 + $0x8] sm:$0xc] %vm513_vm3, %v1229_v22 }
0x15e9   :  { %v881_v33 = vpop.permute.xlu1 %880 }
0x15ea   :  { %885 = vst.msk [vmem:[#allocation2 + $0x8] sm:$0x3] %vm884_vm9, %v881_v33 }
0x15eb   :  { %1053 = vst.msk [vmem:[#allocation2 + $0x8] sm:$0x3] %vm331_vm2, %v1051_v21 }
0x15ed   :  { %v1056_v34 = vpop.permute.xlu1 %1055 }
0x15ee   :  { %1058 = vst.msk [vmem:[#allocation2] sm:$0xc0] %vm338_vm6, %v1056_v34 }
0x15f1   :  { %v1234_v36 = vpop.permute.xlu1 %1233 }
0x15f2   :  { %1236 = vst.msk [vmem:[#allocation2] sm:$0x30] %vm520_vm7, %v1234_v36 }
0x15f5   :  { %v1413_v38 = vpop.permute.xlu1 %1412 }
0x15f6   :  { %1415 = vst.msk [vmem:[#allocation2] sm:$0xc] %vm703_vm8, %v1413_v38 }
0x15f9   :  { %v1590_v40 = vpop.permute.xlu1 %1589 }
0x15fa   :  { %1592 = vst.msk [vmem:[#allocation2] sm:$0x3] %vm884_vm9, %v1590_v40 }
0x15fb   :  { %2181 = shalt.err (!%p2178_p4)
}
0x15fc   :  { %s2182_s30 = scalar_lea.hbm %s2748_s9, 256 }
0x15fd   :  { %p2183_p5 = scmp.ne.s32.totalorder %s2748_s9, %s2182_s30  ;;  %p2186_p6 = scmp.lt.u32.totalorder %s2182_s30, %s2748_s9 }
0x15ff   :  { %p2188_p7 = pnand %p2186_p6, %p2183_p5 }
0x1601   :  { %2191 = shalt.err (!%p2188_p7)
}
0x1602   :  { %s2225_s14 = smov 2   ;;  %v1813_v45 = vld [vmem:[%s2747_s8] ss:$0 sm:$0xff]  ;;  %s2226_s19 = smov [#allocation4]  }
0x1603   :  { %1738 = dma.vmem_to_hbm [thread:$0]  %s1733_s29, 256, %s2748_s9, [#allocation3], %s2223_s6, %s2223_s6, %s2225_s14  }
0x1604   :  { %s1745_s20 = sshll.u32 %s2226_s19, 4  ;;  %s1746_s20 = int_to_ptr.vmem [resolvable:$true] %s1745_s20 }
0x1605   :  { %s2192_s9 = scalar_lea.vmem %s1746_s20, 32  ;;  %p2197_p9 = scmp.lt.s32.totalorder %s1746_s20, %s1746_s20 }
0x1606   :  { %p2193_p8 = scmp.ne.s32.totalorder %s1746_s20, %s2192_s9  ;;  %p2198_p10 = scmp.lt.s32.totalorder %s2192_s9, %s2192_s9 }
0x1608   :  { %p2199_p11 = por %p2198_p10, %p2197_p9 }
0x160a   :  { %p2200_p12 = pnand %p2199_p11, %p2193_p8 }
0x1656   :  { %v1652_v41 = vpop.f32.mrb[32].mxu1 }
0x1657   :  { %v2002_v42 = vpop.f32.mrb[33].mxu1 }
0x1658   :  { %v1655_v43 = vpop.f32.mrb[34].mxu1 }
0x1659   :  { %v2003_v17 = vpop.f32.mrb[35].mxu1 }
0x16ad   :  { %v1711_v44 = vpop.f32.mrb[36].mxu0 }
0x16ae   :  { %v1712_v48 = vadd.f32 %v1711_v44, %v1652_v41  ;;  %v2010_v31 = vpop.f32.mrb[37].mxu0 }
0x16af   :  { %v1714_v49 = vpop.f32.mrb[38].mxu0 }
0x16b0   :  { %v1724_v50 = vadd.f32 %v1813_v45, %v1712_v48  ;;  %v2011_v2 = vpop.f32.mrb[39].mxu0 }
0x16b2   :  { %2164 = vtanh.f32 %v1724_v50 }
0x16bc   :  { %v2165_v53 = vpop.eup %2164 }
0x16bd   :  { %1726 = vst.msk [vmem:[#allocation4] sm:$0x3] %vm331_vm2, %v2165_v53 }
0x16be   :  { %2203 = shalt.err (!%p2200_p12)
}
0x16bf   :  { %s2204_s21 = scalar_lea.hbm %s2749_s10, 32 }
0x16c0   :  { %p2205_p13 = scmp.ne.s32.totalorder %s2749_s10, %s2204_s21  ;;  %p2208_p0 = scmp.lt.u32.totalorder %s2204_s21, %s2749_s10 }
0x16c2   :  { %p2210_p1 = pnand %p2208_p0, %p2205_p13 }
0x16c4   :  { %2213 = shalt.err (!%p2210_p1)
}
0x16c5   :  { %1748 = dma.vmem_to_hbm [thread:$0]  %s1746_s20, 32, %s2749_s10, [#allocation5]  }
0x16c6   :  { %2214 = dma.done.wait [#allocation3], 256  }
0x16c7   :  { %2215 = vsyncadd [#allocation3], 4294967040 }
0x16c8   :  { %2216 = dma.done.wait [#allocation5], 32  }
0x16c9   :  { %2217 = vsyncadd [#allocation5], 4294967264 }
0x16ca   :  { %1755 = vsyncpa [#allocation3], 1 }
0x16cb   :  { %1756 = vsyncpa [#allocation5], 1 }

</bundles_post_ra>
